<compile_context>
chip_gen: v5e
topology: v5e:2x2
jax: 0.10.0
libtpu: 0.0.40
codegen_flags: <defaults>
</compile_context>

<pallas_src>
import numpy as np
import jax
import jax.numpy as jnp
from jax.experimental import pallas as pl
from jax.experimental.pallas import tpu as pltpu


# ---------------------------------------------------------------------------
# Kernel
# ---------------------------------------------------------------------------
def _make_kernel(num_layers, hidden_dim, seq_len):
    H = hidden_dim
    Hb = 2 * H                      # both streams fused along lanes [s1 | s3]
    SW = num_layers * Hb            # wavefront carry width [h_0 | ... | h_{L-1}]
    GW = 4 * SW                     # fused gate width [i | f | o | g]
    T = seq_len
    W = T + num_layers - 1          # number of wavefront steps

    def kernel(x_ref, wih_ref, b_ref, r_ref, head_ref, out_ref, xproj_ref):
        # Hoisted input projection (+ per-layer biases) for every wavefront
        # step: one matmul off the recurrent chain, staged to VMEM scratch so
        # the per-step row reads are sublane vlds (not XLU sublane extracts).
        xproj_ref[...] = (
            jnp.dot(x_ref[...], wih_ref[...], preferred_element_type=jnp.float32)
            + b_ref[...])

        def fused_cell(gates, c):
            # gates: (1, GW) laid out [i | f | o | g], each SW wide, covering
            # every layer (and both streams) at once.
            sfo = jax.nn.sigmoid(gates[:, :3 * SW])      # one EUP region [i|f|o]
            g = jnp.tanh(gates[:, 3 * SW:])              # one EUP region [g]
            i = sfo[:, :SW]
            f = sfo[:, SW:2 * SW]
            o = sfo[:, 2 * SW:]
            c_new = f * c + i * g
            h_new = o * jnp.tanh(c_new)
            return h_new, c_new

        # ---- wavefront step 0: carry is all zero, so gates == pre[0]; only
        # layer 0 has started -> zero the not-yet-started layers' state.
        h, c = fused_cell(xproj_ref[0:1, :], jnp.zeros((1, SW), jnp.float32))
        if num_layers > 1:
            lane = jax.lax.broadcasted_iota(jnp.int32, (1, SW), 1)
            m0 = (lane < Hb).astype(jnp.float32)
            h = h * m0
            c = c * m0

        # ---- wavefront steps 1..W-1: ONE (1,SW)@(SW,GW) matmul per step
        # computes layer l's gates for time (w - l) for every layer, cutting
        # the serial MXU chain from T*L to T+L-1.  r_ref is re-indexed inside
        # the loop so the compiler may reload it via vld slots instead of
        # pinning the whole weight in vregs across the unrolled chain.
        for w in range(1, W):
            gates = xproj_ref[w:w + 1, :] + jnp.dot(
                h.astype(jnp.bfloat16), r_ref[...],
                preferred_element_type=jnp.float32)
            h, c = fused_cell(gates, c)
            if w < num_layers - 1:          # layers l > w have not started yet
                lane = jax.lax.broadcasted_iota(jnp.int32, (1, SW), 1)
                mw = (lane < (w + 1) * Hb).astype(jnp.float32)
                h = h * mw
                c = c * mw

        # After the final step the top layer's carry slot holds h_{L-1}[T-1].
        h_last = h[:, (num_layers - 1) * Hb:]            # (1, Hb) = [s1 | s3]

        # Head: Conv1d(1,1,3,pad=1) per stream -> sum -> Linear, folded on the
        # host into a single (Hb, label) matrix (rows 0..Hb-1) + bias (row Hb).
        hw = head_ref[0:Hb, :]
        hb = head_ref[Hb:Hb + 1, :]
        logits = jnp.dot(h_last, hw, preferred_element_type=jnp.float32) + hb
        m = jnp.max(logits, axis=-1, keepdims=True)
        e = jnp.exp(logits - m)
        out_ref[...] = e * pl.reciprocal(jnp.sum(e, axis=-1, keepdims=True),
                                         approx=True)

    return kernel


# ---------------------------------------------------------------------------
# Host-side weight packing (one-time, constant across calls)
# ---------------------------------------------------------------------------
def _pack_wavefront(p1, p3, H, num_layers, in2d):
    """Build the fused wavefront weights.

    Gate layout (width 4*SW): [i | f | o | g], each block SW = L*2H wide,
    ordered layer-major then stream-major ([l0s1 l0s3 l1s1 l1s3 ...]).
    Returns:
      wih_big (2*in2d, 4*SW): layer-0 input projection scattered into layer-0
                              gate columns (other columns zero).
      r_big   (SW, 4*SW):     W_hh_l on diagonal blocks, W_ih_l on the
                              (l-1 -> l) blocks.
      b_big   (1, 4*SW):      b_ih_l + b_hh_l for every layer/stream/gate.
    """
    Hb = 2 * H
    SW = num_layers * Hb
    GW = 4 * SW
    gate_src = (0, 1, 3, 2)   # kernel gate order [i,f,o,g] -> torch blocks [i,f,g,o]

    def layer_np(p, l):
        wih0, whh0, b0, wihr, whhr, br = p
        if l == 0:
            return (np.asarray(wih0, np.float32), np.asarray(whh0, np.float32),
                    np.asarray(b0, np.float32).reshape(-1))
        return (np.asarray(wihr[l - 1], np.float32),
                np.asarray(whhr[l - 1], np.float32),
                np.asarray(br[l - 1], np.float32).reshape(-1))

    wih_big = np.zeros((2 * in2d, GW), np.float32)
    r_big = np.zeros((SW, GW), np.float32)
    b_big = np.zeros((1, GW), np.float32)

    for l in range(num_layers):
        for s, p in enumerate((p1, p3)):
            wih, whh, b = layer_np(p, l)          # (in,4H), (H,4H), (4H,)
            row_l = l * Hb + s * H                # carry rows of layer l, stream s
            for t, k in enumerate(gate_src):
                dst = slice(t * SW + l * Hb + s * H, t * SW + l * Hb + (s + 1) * H)
                src = slice(k * H, (k + 1) * H)
                b_big[0, dst] = b[src]
                r_big[row_l:row_l + H, dst] = whh[:, src]
                if l == 0:
                    wih_big[s * in2d:(s + 1) * in2d, dst] = wih[:, src]
                else:
                    row_p = (l - 1) * Hb + s * H  # previous layer's carry rows
                    r_big[row_p:row_p + H, dst] = wih[:, src]
    return wih_big, r_big, b_big


def _fold_head(params, H, label_size):
    """Fold conv1(h1)+conv3(h3) -> Linear into one (2H+1, label) slab.

    Conv1d(1,1,3,padding=1) is the banded matrix C with C[i,j] = w[i-j+1];
    logits = [h1|h3] @ [[C1@Wl],[C3@Wl]] + ((cb1+cb3)*1 @ Wl + bl).
    Row 2H of the returned slab is the folded bias.
    """
    def band(w):
        w = np.asarray(w, np.float32).reshape(3)
        C = np.zeros((H, H), np.float32)
        for j in range(H):
            for k in range(3):
                i = j - 1 + k
                if 0 <= i < H:
                    C[i, j] = w[k]
        return C

    Wl = np.asarray(params["lin_w"], np.float32)          # (H, label)
    bl = np.asarray(params["lin_b"], np.float32)          # (1, label)
    C1 = band(params["conv1_2_1_w"])
    C3 = band(params["conv1_2_3_w"])
    cb1 = float(np.asarray(params["conv1_2_1_b"]).reshape(()))
    cb3 = float(np.asarray(params["conv1_2_3_b"]).reshape(()))
    head_w = np.concatenate([C1 @ Wl, C3 @ Wl], axis=0)   # (2H, label)
    head_b = (cb1 + cb3) * (np.ones((1, H), np.float32) @ Wl) + bl
    assert head_w.shape == (2 * H, label_size)
    return np.concatenate([head_w, head_b], axis=0)       # (2H+1, label)


# ---------------------------------------------------------------------------
# Forward wrapper
# ---------------------------------------------------------------------------
def lstm_classifier_forward(params, joints3d_vec, *, num_layers, hidden_dim,
                            label_size, batch_size=1):
    assert batch_size == 1, "PyTorch forward only supports batch_size == 1"
    H = hidden_dim
    in2d = 32
    x2 = jnp.asarray(joints3d_vec, jnp.float32).reshape(-1, 16, 3)
    T = x2.shape[0]
    # Contiguous slices (+concat) instead of fancy indexing (no host gather).
    x2_1 = x2[:, :, 1:3].reshape(T, in2d)                                            # (y, z)
    x2_3 = jnp.concatenate([x2[:, :, 0:1], x2[:, :, 2:3]], axis=2).reshape(T, in2d)   # (x, z)
    x_both = jnp.concatenate([x2_1, x2_3], axis=1)                                   # (T, 64)

    # Pad the sequence with L-1 zero rows for the wavefront tail steps (their
    # "pre" rows then reduce to the biases), rounded up to a sublane multiple.
    w_steps = T + num_layers - 1
    w_pad = ((w_steps + 7) // 8) * 8
    x_pad = jnp.zeros((w_pad, 2 * in2d), jnp.float32).at[:T].set(x_both)

    wih_big, r_big, b_big = _pack_wavefront(params["lstm2_1"], params["lstm2_3"],
                                            H, num_layers, in2d)
    head = _fold_head(params, H, label_size)

    GW = 4 * num_layers * 2 * H
    kernel = _make_kernel(num_layers, H, T)
    out = pl.pallas_call(
        kernel,
        out_shape=jax.ShapeDtypeStruct((batch_size, label_size), jnp.float32),
        in_specs=[pl.BlockSpec(memory_space=pltpu.MemorySpace.VMEM)] * 5,
        out_specs=pl.BlockSpec(memory_space=pltpu.MemorySpace.VMEM),
        scratch_shapes=[pltpu.VMEM((w_pad, GW), jnp.float32)],
    )(x_pad.astype(jnp.bfloat16),                 # matmul operands in bf16,
      jnp.asarray(wih_big, jnp.bfloat16),         # f32 accumulation in-kernel
      jnp.asarray(b_big, jnp.float32),
      jnp.asarray(r_big, jnp.bfloat16),
      jnp.asarray(head, jnp.float32))
    return out


# ---------------------------------------------------------------------------
# Parameter init (matches PyTorch nn.LSTM / nn.Conv1d / nn.Linear layouts)
# ---------------------------------------------------------------------------
def init_params(key, joints_dim, hidden_dim, label_size, num_layers, kernel_size):
    assert kernel_size == 3, "padding=1 'same' conv requires kernel_size=3"
    in2d = joints_dim - 16  # == 32 for joints_dim == 48
    H = hidden_dim
    klstm = 1.0 / np.sqrt(H)
    keys = iter(jax.random.split(key, 128))

    def u(shape, bound):
        return jax.random.uniform(next(keys), shape, jnp.float32, -bound, bound)

    def lstm_params(in_size):
        # PyTorch stores W_ih:(4H,in), W_hh:(4H,H); we keep the transposes and
        # the combined bias b_ih + b_hh, gate order (i, f, g, o).
        wih0 = u((4 * H, in_size), klstm).T            # (in, 4H)
        whh0 = u((4 * H, H), klstm).T                  # (H, 4H)
        b0 = (u((4 * H,), klstm) + u((4 * H,), klstm)).reshape(1, 4 * H)
        nrest = max(num_layers - 1, 1)
        wihr = jnp.stack([u((4 * H, H), klstm).T for _ in range(nrest)])
        whhr = jnp.stack([u((4 * H, H), klstm).T for _ in range(nrest)])
        br = jnp.stack([u((4 * H,), klstm) + u((4 * H,), klstm) for _ in range(nrest)])
        if num_layers == 1:  # unused dummy slots
            wihr = jnp.zeros_like(wihr); whhr = jnp.zeros_like(whhr); br = jnp.zeros_like(br)
        return (wih0, whh0, b0, wihr, whhr, br)

    kconv = 1.0 / np.sqrt(1 * kernel_size)
    klin = 1.0 / np.sqrt(H)
    return {
        "lstm2_1": lstm_params(in2d),
        "lstm2_3": lstm_params(in2d),
        "conv1_2_1_w": u((1, kernel_size), kconv),
        "conv1_2_1_b": u((1, 1), kconv),
        "conv1_2_3_w": u((1, kernel_size), kconv),
        "conv1_2_3_b": u((1, 1), kconv),
        "lin_w": u((label_size, H), klin).T,           # (H, label)
        "lin_b": u((1, label_size), klin),
    }


# ---------------------------------------------------------------------------
# Pure-JAX reference (exact f32, sequential layers/streams, unfolded head)
# ---------------------------------------------------------------------------
def reference_forward(params, joints3d_vec, *, num_layers, hidden_dim, label_size):
    H = hidden_dim
    x2 = joints3d_vec.reshape(-1, 16, 3).astype(jnp.float32)
    T = x2.shape[0]
    x2_1 = x2[:, :, 1:3].reshape(T, 32)
    x2_3 = x2[:, :, jnp.array([0, 2])].reshape(T, 32)

    def run_lstm(x, p):
        wih0, whh0, b0, wihr, whhr, br = p
        layers = [(wih0, whh0, b0)]
        for l in range(1, num_layers):
            layers.append((wihr[l - 1], whhr[l - 1], br[l - 1:l]))
        seq = x
        for (wih, whh, b) in layers:
            h = jnp.zeros((1, H)); c = jnp.zeros((1, H))
            outs = []
            for t in range(seq.shape[0]):
                g = seq[t:t + 1] @ wih + h @ whh + b
                i = jax.nn.sigmoid(g[:, :H]); f = jax.nn.sigmoid(g[:, H:2 * H])
                gg = jnp.tanh(g[:, 2 * H:3 * H]); o = jax.nn.sigmoid(g[:, 3 * H:])
                c = f * c + i * gg
                h = o * jnp.tanh(c)
                outs.append(h)
            seq = jnp.concatenate(outs, axis=0)
        return seq[-1:]

    h1 = run_lstm(x2_1, params["lstm2_1"])
    h3 = run_lstm(x2_3, params["lstm2_3"])

    def conv(h, w, b):
        hp = jnp.pad(h, ((0, 0), (1, 1)))
        return w[0, 0] * hp[:, :-2] + w[0, 1] * hp[:, 1:-1] + w[0, 2] * hp[:, 2:] + b[0, 0]

    y = (conv(h1, params["conv1_2_1_w"], params["conv1_2_1_b"])
         + conv(h3, params["conv1_2_3_w"], params["conv1_2_3_b"]))
    logits = y @ params["lin_w"] + params["lin_b"]
    return jax.nn.softmax(logits, axis=1)


if __name__ == "__main__":
    joints_dim = 48      # 16 joints x 3 coords -> joints_dim2d = 32
    hidden_dim = 32
    label_size = 8
    batch_size = 1
    num_layers = 2
    kernel_size = 3
    seq_len = 8

    key = jax.random.PRNGKey(0)
    pkey, xkey = jax.random.split(key)
    params = init_params(pkey, joints_dim, hidden_dim, label_size, num_layers, kernel_size)
    joints3d_vec = jax.random.normal(xkey, (seq_len, joints_dim), jnp.float32)

    out = lstm_classifier_forward(params, joints3d_vec, num_layers=num_layers,
                                  hidden_dim=hidden_dim, label_size=label_size,
                                  batch_size=batch_size)
    out = jax.block_until_ready(out)
    assert out.shape == (batch_size, label_size)

    with jax.default_matmul_precision("highest"):
        ref = reference_forward(params, joints3d_vec, num_layers=num_layers,
                                hidden_dim=hidden_dim, label_size=label_size)
    ref = jax.block_until_ready(ref)
    # Kernel matmuls use bf16 operands / f32 accumulation (single MXU pass) and
    # an approx-reciprocal softmax, so compare against the exact-f32 reference
    # at a relaxed tolerance on the probability vector.
    np.testing.assert_allclose(np.asarray(out), np.asarray(ref), rtol=2e-2, atol=2e-2)

    print("KERNEL_OK")
</pallas_src>

<mosaic_0001>
module attributes {stable_mosaic.version = 11 : i64} {
  func.func @kernel(%arg0: memref<16x64xbf16, #tpu.memory_space<vmem>>, %arg1: memref<64x512xbf16, #tpu.memory_space<vmem>>, %arg2: memref<1x512xf32, #tpu.memory_space<vmem>>, %arg3: memref<128x512xbf16, #tpu.memory_space<vmem>>, %arg4: memref<65x8xf32, #tpu.memory_space<vmem>>, %arg5: memref<1x8xf32, #tpu.memory_space<vmem>>, %arg6: memref<16x512xf32, #tpu.memory_space<vmem>>) attributes {dimension_semantics = [], scalar_prefetch = 0 : i64, scratch_operands = 1 : i64, tpu.core_type = #tpu.core_type<tc>} {
    %c0 = arith.constant 0 : index
    %c0_0 = arith.constant 0 : index
    %0 = vector.load %arg0[%c0, %c0_0] : memref<16x64xbf16, #tpu.memory_space<vmem>>, vector<16x64xbf16>
    %c0_1 = arith.constant 0 : index
    %c0_2 = arith.constant 0 : index
    %1 = vector.load %arg1[%c0_1, %c0_2] : memref<64x512xbf16, #tpu.memory_space<vmem>>, vector<64x512xbf16>
    %cst = arith.constant dense<0.000000e+00> : vector<16x512xf32>
    %2 = tpu.matmul %0, %1, %cst {dimension_numbers = #tpu.dot_dimension_numbers<[1], [0], [0], [1], [0, 0, 1, 1], [], []>} : vector<16x64xbf16>, vector<64x512xbf16>, vector<16x512xf32> -> vector<16x512xf32>
    %c0_3 = arith.constant 0 : index
    %c0_4 = arith.constant 0 : index
    %3 = vector.load %arg2[%c0_3, %c0_4] : memref<1x512xf32, #tpu.memory_space<vmem>>, vector<1x512xf32>
    %4 = vector.broadcast %3 : vector<1x512xf32> to vector<16x512xf32>
    %5 = arith.addf %2, %4 : vector<16x512xf32>
    %c0_5 = arith.constant 0 : index
    %c0_6 = arith.constant 0 : index
    %6 = vector.load %arg6[%c0_5, %c0_6] : memref<16x512xf32, #tpu.memory_space<vmem>>, vector<16x512xf32>
    tpu.vector_store %arg6[%c0_5, %c0_6], %5 {strides = array<i32>} : memref<16x512xf32, #tpu.memory_space<vmem>>, vector<16x512xf32>,
    %c0_7 = arith.constant 0 : index
    %c0_8 = arith.constant 0 : index
    %7 = vector.load %arg6[%c0_7, %c0_8] : memref<16x512xf32, #tpu.memory_space<vmem>>, vector<1x512xf32>
    %cst_9 = arith.constant 0.000000e+00 : f32
    %8 = vector.broadcast %cst_9 : f32 to vector<1x128xf32>
    %9 = vector.extract_strided_slice %7 {offsets = [0, 0], sizes = [1, 384], strides = [1, 1]} : vector<1x512xf32> to vector<1x384xf32>
    %10 = arith.negf %9 : vector<1x384xf32>
    %11 = math.exp %10 : vector<1x384xf32>
    %cst_10 = arith.constant 1.000000e+00 : f32
    %12 = vector.broadcast %cst_10 : f32 to vector<1x384xf32>
    %13 = arith.addf %12, %11 : vector<1x384xf32>
    %14 = arith.divf %12, %13 : vector<1x384xf32>
    %15 = vector.extract_strided_slice %7 {offsets = [0, 384], sizes = [1, 128], strides = [1, 1]} : vector<1x512xf32> to vector<1x128xf32>
    %16 = math.tanh %15 : vector<1x128xf32>
    %17 = vector.extract_strided_slice %14 {offsets = [0, 0], sizes = [1, 128], strides = [1, 1]} : vector<1x384xf32> to vector<1x128xf32>
    %18 = vector.extract_strided_slice %14 {offsets = [0, 128], sizes = [1, 128], strides = [1, 1]} : vector<1x384xf32> to vector<1x128xf32>
    %19 = vector.extract_strided_slice %14 {offsets = [0, 256], sizes = [1, 128], strides = [1, 1]} : vector<1x384xf32> to vector<1x128xf32>
    %20 = arith.mulf %18, %8 : vector<1x128xf32>
    %21 = arith.mulf %17, %16 : vector<1x128xf32>
    %22 = arith.addf %20, %21 : vector<1x128xf32>
    %23 = math.tanh %22 : vector<1x128xf32>
    %24 = arith.mulf %19, %23 : vector<1x128xf32>
    %25 = tpu.iota {dimensions = array<i32: 1>} : vector<1x128xi32>
    %c64_i32 = arith.constant 64 : i32
    %26 = vector.broadcast %c64_i32 : i32 to vector<1x128xi32>
    %27 = arith.cmpi slt, %25, %26 : vector<1x128xi32>
    %28 = arith.extui %27 : vector<1x128xi1> to vector<1x128xi32>
    %29 = arith.sitofp %28 : vector<1x128xi32> to vector<1x128xf32>
    %30 = arith.mulf %24, %29 : vector<1x128xf32>
    %31 = arith.mulf %22, %29 : vector<1x128xf32>
    %c1 = arith.constant 1 : index
    %c0_11 = arith.constant 0 : index
    %32 = vector.load %arg6[%c1, %c0_11] : memref<16x512xf32, #tpu.memory_space<vmem>>, vector<1x512xf32>
    %33 = arith.truncf %30 : vector<1x128xf32> to vector<1x128xbf16>
    %c0_12 = arith.constant 0 : index
    %c0_13 = arith.constant 0 : index
    %34 = vector.load %arg3[%c0_12, %c0_13] : memref<128x512xbf16, #tpu.memory_space<vmem>>, vector<128x512xbf16>
    %cst_14 = arith.constant dense<0.000000e+00> : vector<1x512xf32>
    %35 = tpu.matmul %33, %34, %cst_14 {dimension_numbers = #tpu.dot_dimension_numbers<[1], [0], [0], [1], [0, 0, 1, 1], [], []>} : vector<1x128xbf16>, vector<128x512xbf16>, vector<1x512xf32> -> vector<1x512xf32>
    %36 = arith.addf %32, %35 : vector<1x512xf32>
    %37 = vector.extract_strided_slice %36 {offsets = [0, 0], sizes = [1, 384], strides = [1, 1]} : vector<1x512xf32> to vector<1x384xf32>
    %38 = arith.negf %37 : vector<1x384xf32>
    %39 = math.exp %38 : vector<1x384xf32>
    %cst_15 = arith.constant 1.000000e+00 : f32
    %40 = vector.broadcast %cst_15 : f32 to vector<1x384xf32>
    %41 = arith.addf %40, %39 : vector<1x384xf32>
    %42 = arith.divf %40, %41 : vector<1x384xf32>
    %43 = vector.extract_strided_slice %36 {offsets = [0, 384], sizes = [1, 128], strides = [1, 1]} : vector<1x512xf32> to vector<1x128xf32>
    %44 = math.tanh %43 : vector<1x128xf32>
    %45 = vector.extract_strided_slice %42 {offsets = [0, 0], sizes = [1, 128], strides = [1, 1]} : vector<1x384xf32> to vector<1x128xf32>
    %46 = vector.extract_strided_slice %42 {offsets = [0, 128], sizes = [1, 128], strides = [1, 1]} : vector<1x384xf32> to vector<1x128xf32>
    %47 = vector.extract_strided_slice %42 {offsets = [0, 256], sizes = [1, 128], strides = [1, 1]} : vector<1x384xf32> to vector<1x128xf32>
    %48 = arith.mulf %46, %31 : vector<1x128xf32>
    %49 = arith.mulf %45, %44 : vector<1x128xf32>
    %50 = arith.addf %48, %49 : vector<1x128xf32>
    %51 = math.tanh %50 : vector<1x128xf32>
    %52 = arith.mulf %47, %51 : vector<1x128xf32>
    %c2 = arith.constant 2 : index
    %c0_16 = arith.constant 0 : index
    %53 = vector.load %arg6[%c2, %c0_16] : memref<16x512xf32, #tpu.memory_space<vmem>>, vector<1x512xf32>
    %54 = arith.truncf %52 : vector<1x128xf32> to vector<1x128xbf16>
    %c0_17 = arith.constant 0 : index
    %c0_18 = arith.constant 0 : index
    %55 = vector.load %arg3[%c0_17, %c0_18] : memref<128x512xbf16, #tpu.memory_space<vmem>>, vector<128x512xbf16>
    %cst_19 = arith.constant dense<0.000000e+00> : vector<1x512xf32>
    %56 = tpu.matmul %54, %55, %cst_19 {dimension_numbers = #tpu.dot_dimension_numbers<[1], [0], [0], [1], [0, 0, 1, 1], [], []>} : vector<1x128xbf16>, vector<128x512xbf16>, vector<1x512xf32> -> vector<1x512xf32>
    %57 = arith.addf %53, %56 : vector<1x512xf32>
    %58 = vector.extract_strided_slice %57 {offsets = [0, 0], sizes = [1, 384], strides = [1, 1]} : vector<1x512xf32> to vector<1x384xf32>
    %59 = arith.negf %58 : vector<1x384xf32>
    %60 = math.exp %59 : vector<1x384xf32>
    %cst_20 = arith.constant 1.000000e+00 : f32
    %61 = vector.broadcast %cst_20 : f32 to vector<1x384xf32>
    %62 = arith.addf %61, %60 : vector<1x384xf32>
    %63 = arith.divf %61, %62 : vector<1x384xf32>
    %64 = vector.extract_strided_slice %57 {offsets = [0, 384], sizes = [1, 128], strides = [1, 1]} : vector<1x512xf32> to vector<1x128xf32>
    %65 = math.tanh %64 : vector<1x128xf32>
    %66 = vector.extract_strided_slice %63 {offsets = [0, 0], sizes = [1, 128], strides = [1, 1]} : vector<1x384xf32> to vector<1x128xf32>
    %67 = vector.extract_strided_slice %63 {offsets = [0, 128], sizes = [1, 128], strides = [1, 1]} : vector<1x384xf32> to vector<1x128xf32>
    %68 = vector.extract_strided_slice %63 {offsets = [0, 256], sizes = [1, 128], strides = [1, 1]} : vector<1x384xf32> to vector<1x128xf32>
    %69 = arith.mulf %67, %50 : vector<1x128xf32>
    %70 = arith.mulf %66, %65 : vector<1x128xf32>
    %71 = arith.addf %69, %70 : vector<1x128xf32>
    %72 = math.tanh %71 : vector<1x128xf32>
    %73 = arith.mulf %68, %72 : vector<1x128xf32>
    %c3 = arith.constant 3 : index
    %c0_21 = arith.constant 0 : index
    %74 = vector.load %arg6[%c3, %c0_21] : memref<16x512xf32, #tpu.memory_space<vmem>>, vector<1x512xf32>
    %75 = arith.truncf %73 : vector<1x128xf32> to vector<1x128xbf16>
    %c0_22 = arith.constant 0 : index
    %c0_23 = arith.constant 0 : index
    %76 = vector.load %arg3[%c0_22, %c0_23] : memref<128x512xbf16, #tpu.memory_space<vmem>>, vector<128x512xbf16>
    %cst_24 = arith.constant dense<0.000000e+00> : vector<1x512xf32>
    %77 = tpu.matmul %75, %76, %cst_24 {dimension_numbers = #tpu.dot_dimension_numbers<[1], [0], [0], [1], [0, 0, 1, 1], [], []>} : vector<1x128xbf16>, vector<128x512xbf16>, vector<1x512xf32> -> vector<1x512xf32>
    %78 = arith.addf %74, %77 : vector<1x512xf32>
    %79 = vector.extract_strided_slice %78 {offsets = [0, 0], sizes = [1, 384], strides = [1, 1]} : vector<1x512xf32> to vector<1x384xf32>
    %80 = arith.negf %79 : vector<1x384xf32>
    %81 = math.exp %80 : vector<1x384xf32>
    %cst_25 = arith.constant 1.000000e+00 : f32
    %82 = vector.broadcast %cst_25 : f32 to vector<1x384xf32>
    %83 = arith.addf %82, %81 : vector<1x384xf32>
    %84 = arith.divf %82, %83 : vector<1x384xf32>
    %85 = vector.extract_strided_slice %78 {offsets = [0, 384], sizes = [1, 128], strides = [1, 1]} : vector<1x512xf32> to vector<1x128xf32>
    %86 = math.tanh %85 : vector<1x128xf32>
    %87 = vector.extract_strided_slice %84 {offsets = [0, 0], sizes = [1, 128], strides = [1, 1]} : vector<1x384xf32> to vector<1x128xf32>
    %88 = vector.extract_strided_slice %84 {offsets = [0, 128], sizes = [1, 128], strides = [1, 1]} : vector<1x384xf32> to vector<1x128xf32>
    %89 = vector.extract_strided_slice %84 {offsets = [0, 256], sizes = [1, 128], strides = [1, 1]} : vector<1x384xf32> to vector<1x128xf32>
    %90 = arith.mulf %88, %71 : vector<1x128xf32>
    %91 = arith.mulf %87, %86 : vector<1x128xf32>
    %92 = arith.addf %90, %91 : vector<1x128xf32>
    %93 = math.tanh %92 : vector<1x128xf32>
    %94 = arith.mulf %89, %93 : vector<1x128xf32>
    %c4 = arith.constant 4 : index
    %c0_26 = arith.constant 0 : index
    %95 = vector.load %arg6[%c4, %c0_26] : memref<16x512xf32, #tpu.memory_space<vmem>>, vector<1x512xf32>
    %96 = arith.truncf %94 : vector<1x128xf32> to vector<1x128xbf16>
    %c0_27 = arith.constant 0 : index
    %c0_28 = arith.constant 0 : index
    %97 = vector.load %arg3[%c0_27, %c0_28] : memref<128x512xbf16, #tpu.memory_space<vmem>>, vector<128x512xbf16>
    %cst_29 = arith.constant dense<0.000000e+00> : vector<1x512xf32>
    %98 = tpu.matmul %96, %97, %cst_29 {dimension_numbers = #tpu.dot_dimension_numbers<[1], [0], [0], [1], [0, 0, 1, 1], [], []>} : vector<1x128xbf16>, vector<128x512xbf16>, vector<1x512xf32> -> vector<1x512xf32>
    %99 = arith.addf %95, %98 : vector<1x512xf32>
    %100 = vector.extract_strided_slice %99 {offsets = [0, 0], sizes = [1, 384], strides = [1, 1]} : vector<1x512xf32> to vector<1x384xf32>
    %101 = arith.negf %100 : vector<1x384xf32>
    %102 = math.exp %101 : vector<1x384xf32>
    %cst_30 = arith.constant 1.000000e+00 : f32
    %103 = vector.broadcast %cst_30 : f32 to vector<1x384xf32>
    %104 = arith.addf %103, %102 : vector<1x384xf32>
    %105 = arith.divf %103, %104 : vector<1x384xf32>
    %106 = vector.extract_strided_slice %99 {offsets = [0, 384], sizes = [1, 128], strides = [1, 1]} : vector<1x512xf32> to vector<1x128xf32>
    %107 = math.tanh %106 : vector<1x128xf32>
    %108 = vector.extract_strided_slice %105 {offsets = [0, 0], sizes = [1, 128], strides = [1, 1]} : vector<1x384xf32> to vector<1x128xf32>
    %109 = vector.extract_strided_slice %105 {offsets = [0, 128], sizes = [1, 128], strides = [1, 1]} : vector<1x384xf32> to vector<1x128xf32>
    %110 = vector.extract_strided_slice %105 {offsets = [0, 256], sizes = [1, 128], strides = [1, 1]} : vector<1x384xf32> to vector<1x128xf32>
    %111 = arith.mulf %109, %92 : vector<1x128xf32>
    %112 = arith.mulf %108, %107 : vector<1x128xf32>
    %113 = arith.addf %111, %112 : vector<1x128xf32>
    %114 = math.tanh %113 : vector<1x128xf32>
    %115 = arith.mulf %110, %114 : vector<1x128xf32>
    %c5 = arith.constant 5 : index
    %c0_31 = arith.constant 0 : index
    %116 = vector.load %arg6[%c5, %c0_31] : memref<16x512xf32, #tpu.memory_space<vmem>>, vector<1x512xf32>
    %117 = arith.truncf %115 : vector<1x128xf32> to vector<1x128xbf16>
    %c0_32 = arith.constant 0 : index
    %c0_33 = arith.constant 0 : index
    %118 = vector.load %arg3[%c0_32, %c0_33] : memref<128x512xbf16, #tpu.memory_space<vmem>>, vector<128x512xbf16>
    %cst_34 = arith.constant dense<0.000000e+00> : vector<1x512xf32>
    %119 = tpu.matmul %117, %118, %cst_34 {dimension_numbers = #tpu.dot_dimension_numbers<[1], [0], [0], [1], [0, 0, 1, 1], [], []>} : vector<1x128xbf16>, vector<128x512xbf16>, vector<1x512xf32> -> vector<1x512xf32>
    %120 = arith.addf %116, %119 : vector<1x512xf32>
    %121 = vector.extract_strided_slice %120 {offsets = [0, 0], sizes = [1, 384], strides = [1, 1]} : vector<1x512xf32> to vector<1x384xf32>
    %122 = arith.negf %121 : vector<1x384xf32>
    %123 = math.exp %122 : vector<1x384xf32>
    %cst_35 = arith.constant 1.000000e+00 : f32
    %124 = vector.broadcast %cst_35 : f32 to vector<1x384xf32>
    %125 = arith.addf %124, %123 : vector<1x384xf32>
    %126 = arith.divf %124, %125 : vector<1x384xf32>
    %127 = vector.extract_strided_slice %120 {offsets = [0, 384], sizes = [1, 128], strides = [1, 1]} : vector<1x512xf32> to vector<1x128xf32>
    %128 = math.tanh %127 : vector<1x128xf32>
    %129 = vector.extract_strided_slice %126 {offsets = [0, 0], sizes = [1, 128], strides = [1, 1]} : vector<1x384xf32> to vector<1x128xf32>
    %130 = vector.extract_strided_slice %126 {offsets = [0, 128], sizes = [1, 128], strides = [1, 1]} : vector<1x384xf32> to vector<1x128xf32>
    %131 = vector.extract_strided_slice %126 {offsets = [0, 256], sizes = [1, 128], strides = [1, 1]} : vector<1x384xf32> to vector<1x128xf32>
    %132 = arith.mulf %130, %113 : vector<1x128xf32>
    %133 = arith.mulf %129, %128 : vector<1x128xf32>
    %134 = arith.addf %132, %133 : vector<1x128xf32>
    %135 = math.tanh %134 : vector<1x128xf32>
    %136 = arith.mulf %131, %135 : vector<1x128xf32>
    %c6 = arith.constant 6 : index
    %c0_36 = arith.constant 0 : index
    %137 = vector.load %arg6[%c6, %c0_36] : memref<16x512xf32, #tpu.memory_space<vmem>>, vector<1x512xf32>
    %138 = arith.truncf %136 : vector<1x128xf32> to vector<1x128xbf16>
    %c0_37 = arith.constant 0 : index
    %c0_38 = arith.constant 0 : index
    %139 = vector.load %arg3[%c0_37, %c0_38] : memref<128x512xbf16, #tpu.memory_space<vmem>>, vector<128x512xbf16>
    %cst_39 = arith.constant dense<0.000000e+00> : vector<1x512xf32>
    %140 = tpu.matmul %138, %139, %cst_39 {dimension_numbers = #tpu.dot_dimension_numbers<[1], [0], [0], [1], [0, 0, 1, 1], [], []>} : vector<1x128xbf16>, vector<128x512xbf16>, vector<1x512xf32> -> vector<1x512xf32>
    %141 = arith.addf %137, %140 : vector<1x512xf32>
    %142 = vector.extract_strided_slice %141 {offsets = [0, 0], sizes = [1, 384], strides = [1, 1]} : vector<1x512xf32> to vector<1x384xf32>
    %143 = arith.negf %142 : vector<1x384xf32>
    %144 = math.exp %143 : vector<1x384xf32>
    %cst_40 = arith.constant 1.000000e+00 : f32
    %145 = vector.broadcast %cst_40 : f32 to vector<1x384xf32>
    %146 = arith.addf %145, %144 : vector<1x384xf32>
    %147 = arith.divf %145, %146 : vector<1x384xf32>
    %148 = vector.extract_strided_slice %141 {offsets = [0, 384], sizes = [1, 128], strides = [1, 1]} : vector<1x512xf32> to vector<1x128xf32>
    %149 = math.tanh %148 : vector<1x128xf32>
    %150 = vector.extract_strided_slice %147 {offsets = [0, 0], sizes = [1, 128], strides = [1, 1]} : vector<1x384xf32> to vector<1x128xf32>
    %151 = vector.extract_strided_slice %147 {offsets = [0, 128], sizes = [1, 128], strides = [1, 1]} : vector<1x384xf32> to vector<1x128xf32>
    %152 = vector.extract_strided_slice %147 {offsets = [0, 256], sizes = [1, 128], strides = [1, 1]} : vector<1x384xf32> to vector<1x128xf32>
    %153 = arith.mulf %151, %134 : vector<1x128xf32>
    %154 = arith.mulf %150, %149 : vector<1x128xf32>
    %155 = arith.addf %153, %154 : vector<1x128xf32>
    %156 = math.tanh %155 : vector<1x128xf32>
    %157 = arith.mulf %152, %156 : vector<1x128xf32>
    %c7 = arith.constant 7 : index
    %c0_41 = arith.constant 0 : index
    %158 = vector.load %arg6[%c7, %c0_41] : memref<16x512xf32, #tpu.memory_space<vmem>>, vector<1x512xf32>
    %159 = arith.truncf %157 : vector<1x128xf32> to vector<1x128xbf16>
    %c0_42 = arith.constant 0 : index
    %c0_43 = arith.constant 0 : index
    %160 = vector.load %arg3[%c0_42, %c0_43] : memref<128x512xbf16, #tpu.memory_space<vmem>>, vector<128x512xbf16>
    %cst_44 = arith.constant dense<0.000000e+00> : vector<1x512xf32>
    %161 = tpu.matmul %159, %160, %cst_44 {dimension_numbers = #tpu.dot_dimension_numbers<[1], [0], [0], [1], [0, 0, 1, 1], [], []>} : vector<1x128xbf16>, vector<128x512xbf16>, vector<1x512xf32> -> vector<1x512xf32>
    %162 = arith.addf %158, %161 : vector<1x512xf32>
    %163 = vector.extract_strided_slice %162 {offsets = [0, 0], sizes = [1, 384], strides = [1, 1]} : vector<1x512xf32> to vector<1x384xf32>
    %164 = arith.negf %163 : vector<1x384xf32>
    %165 = math.exp %164 : vector<1x384xf32>
    %cst_45 = arith.constant 1.000000e+00 : f32
    %166 = vector.broadcast %cst_45 : f32 to vector<1x384xf32>
    %167 = arith.addf %166, %165 : vector<1x384xf32>
    %168 = arith.divf %166, %167 : vector<1x384xf32>
    %169 = vector.extract_strided_slice %162 {offsets = [0, 384], sizes = [1, 128], strides = [1, 1]} : vector<1x512xf32> to vector<1x128xf32>
    %170 = math.tanh %169 : vector<1x128xf32>
    %171 = vector.extract_strided_slice %168 {offsets = [0, 0], sizes = [1, 128], strides = [1, 1]} : vector<1x384xf32> to vector<1x128xf32>
    %172 = vector.extract_strided_slice %168 {offsets = [0, 128], sizes = [1, 128], strides = [1, 1]} : vector<1x384xf32> to vector<1x128xf32>
    %173 = vector.extract_strided_slice %168 {offsets = [0, 256], sizes = [1, 128], strides = [1, 1]} : vector<1x384xf32> to vector<1x128xf32>
    %174 = arith.mulf %172, %155 : vector<1x128xf32>
    %175 = arith.mulf %171, %170 : vector<1x128xf32>
    %176 = arith.addf %174, %175 : vector<1x128xf32>
    %177 = math.tanh %176 : vector<1x128xf32>
    %178 = arith.mulf %173, %177 : vector<1x128xf32>
    %c8 = arith.constant 8 : index
    %c0_46 = arith.constant 0 : index
    %179 = vector.load %arg6[%c8, %c0_46] : memref<16x512xf32, #tpu.memory_space<vmem>>, vector<1x512xf32>
    %180 = arith.truncf %178 : vector<1x128xf32> to vector<1x128xbf16>
    %c0_47 = arith.constant 0 : index
    %c0_48 = arith.constant 0 : index
    %181 = vector.load %arg3[%c0_47, %c0_48] : memref<128x512xbf16, #tpu.memory_space<vmem>>, vector<128x512xbf16>
    %cst_49 = arith.constant dense<0.000000e+00> : vector<1x512xf32>
    %182 = tpu.matmul %180, %181, %cst_49 {dimension_numbers = #tpu.dot_dimension_numbers<[1], [0], [0], [1], [0, 0, 1, 1], [], []>} : vector<1x128xbf16>, vector<128x512xbf16>, vector<1x512xf32> -> vector<1x512xf32>
    %183 = arith.addf %179, %182 : vector<1x512xf32>
    %184 = vector.extract_strided_slice %183 {offsets = [0, 0], sizes = [1, 384], strides = [1, 1]} : vector<1x512xf32> to vector<1x384xf32>
    %185 = arith.negf %184 : vector<1x384xf32>
    %186 = math.exp %185 : vector<1x384xf32>
    %cst_50 = arith.constant 1.000000e+00 : f32
    %187 = vector.broadcast %cst_50 : f32 to vector<1x384xf32>
    %188 = arith.addf %187, %186 : vector<1x384xf32>
    %189 = arith.divf %187, %188 : vector<1x384xf32>
    %190 = vector.extract_strided_slice %183 {offsets = [0, 384], sizes = [1, 128], strides = [1, 1]} : vector<1x512xf32> to vector<1x128xf32>
    %191 = math.tanh %190 : vector<1x128xf32>
    %192 = vector.extract_strided_slice %189 {offsets = [0, 0], sizes = [1, 128], strides = [1, 1]} : vector<1x384xf32> to vector<1x128xf32>
    %193 = vector.extract_strided_slice %189 {offsets = [0, 128], sizes = [1, 128], strides = [1, 1]} : vector<1x384xf32> to vector<1x128xf32>
    %194 = vector.extract_strided_slice %189 {offsets = [0, 256], sizes = [1, 128], strides = [1, 1]} : vector<1x384xf32> to vector<1x128xf32>
    %195 = arith.mulf %193, %176 : vector<1x128xf32>
    %196 = arith.mulf %192, %191 : vector<1x128xf32>
    %197 = arith.addf %195, %196 : vector<1x128xf32>
    %198 = math.tanh %197 : vector<1x128xf32>
    %199 = arith.mulf %194, %198 : vector<1x128xf32>
    %200 = vector.extract_strided_slice %199 {offsets = [0, 64], sizes = [1, 64], strides = [1, 1]} : vector<1x128xf32> to vector<1x64xf32>
    %c0_51 = arith.constant 0 : index
    %c0_52 = arith.constant 0 : index
    %201 = vector.load %arg4[%c0_51, %c0_52] : memref<65x8xf32, #tpu.memory_space<vmem>>, vector<64x8xf32>
    %c64 = arith.constant 64 : index
    %c0_53 = arith.constant 0 : index
    %202 = vector.load %arg4[%c64, %c0_53] : memref<65x8xf32, #tpu.memory_space<vmem>>, vector<1x8xf32>
    %cst_54 = arith.constant dense<0.000000e+00> : vector<1x8xf32>
    %203 = tpu.matmul %200, %201, %cst_54 {dimension_numbers = #tpu.dot_dimension_numbers<[1], [0], [0], [1], [0, 0, 1, 1], [], []>} : vector<1x64xf32>, vector<64x8xf32>, vector<1x8xf32> -> vector<1x8xf32>
    %204 = arith.addf %203, %202 : vector<1x8xf32>
    %cst_55 = arith.constant dense<0xFF800000> : vector<1xf32>
    %205 = vector.multi_reduction <maximumf>, %204, %cst_55 [1] : vector<1x8xf32> to vector<1xf32>
    %206 = vector.shape_cast %205 : vector<1xf32> to vector<1x1xf32>
    %207 = vector.broadcast %206 : vector<1x1xf32> to vector<1x8xf32>
    %208 = arith.subf %204, %207 : vector<1x8xf32>
    %209 = math.exp %208 : vector<1x8xf32>
    %cst_56 = arith.constant dense<0.000000e+00> : vector<1xf32>
    %210 = vector.multi_reduction <add>, %209, %cst_56 [1] : vector<1x8xf32> to vector<1xf32>
    %211 = vector.shape_cast %210 : vector<1xf32> to vector<1x1xf32>
    %212 = tpu.reciprocal %211 {approx = true} : vector<1x1xf32> -> vector<1x1xf32>
    %213 = vector.broadcast %212 : vector<1x1xf32> to vector<1x8xf32>
    %214 = arith.mulf %209, %213 : vector<1x8xf32>
    %c0_57 = arith.constant 0 : index
    %c0_58 = arith.constant 0 : index
    %215 = vector.load %arg5[%c0_57, %c0_58] : memref<1x8xf32, #tpu.memory_space<vmem>>, vector<1x8xf32>
    tpu.vector_store %arg5[%c0_57, %c0_58], %214 {strides = array<i32>} : memref<1x8xf32, #tpu.memory_space<vmem>>, vector<1x8xf32>,
    return
  }
}

</mosaic_0001>

<bundles_post_ra>
// kernel: tpu_custom_call.1
= control target key start
LH: loop header
LB: loop body
LE: loop exit
PB: predicated region body
PF: predicated region fallthrough
CT: control target
= control target key end

     0   :  { %10 = vsyncpa [#allocation4], 0  ;;  %s2230_s0 = inlined_call_operand.vmem [shape: bf16[16,64], index: 0, kind: input, shape index: {}]   ;;  %s2231_s1 = inlined_call_operand.hbm [shape: bf16[64,512], index: 1, kind: input, shape index: {}]   ;;  %s2232_s2 = inlined_call_operand.vmem [shape: f32[1,512], index: 2, kind: input, shape index: {}]   ;;  %s2233_s3 = inlined_call_operand.hbm [shape: bf16[128,512], index: 3, kind: input, shape index: {}]   ;;  %s2234_s4 = inlined_call_operand.vmem [shape: f32[65,8], index: 4, kind: input, shape index: {}]   ;;  %s2235_s5 = inlined_call_operand.hbm [shape: f32[1,8], index: 5, kind: output, shape index: {}]  }
   0x1   :  { %11 = vsyncpa [#allocation7], 0 }
   0x2   :  { %12 = vsyncpa [#allocation5], 0  ;;  %s19_s20 = sshll.u32 %s2231_s1, 4  ;;  %s1758_s21 = smov [#allocation3]   ;;  %s20_s20 = int_to_ptr.hbm [resolvable:$true] %s19_s20 }
   0x3   :  { %s21_s22 = sshll.u32 %s1758_s21, 4  ;;  %s34_s25 = sshll.u32 %s2233_s3, 4  ;;  %s22_s22 = int_to_ptr.vmem [resolvable:$true] %s21_s22  ;;  %s35_s25 = int_to_ptr.hbm [resolvable:$true] %s34_s25 }
   0x4   :  { %s1759_s26 = smov 256   ;;  %s1760_s27 = smov 16  }
   0x5   :  { %27 = dma.hbm_to_vmem [thread:$0]  %s20_s20, 2048, %s22_s22, [#allocation4], %s1759_s26, %s1759_s26, %s1760_s27  }
   0x6   :  { %s1761_s28 = smov [#allocation6]  }
   0x7   :  { %s36_s29 = sshll.u32 %s1761_s28, 4  ;;  %s37_s29 = int_to_ptr.vmem [resolvable:$true] %s36_s29 }
   0x8   :  { %42 = dma.hbm_to_vmem [thread:$0]  %s35_s25, 4096, %s37_s29, [#allocation7], %s1759_s26, %s1759_s26, %s1760_s27  }
   0x9   :  { %1752 = dma.done.wait [#allocation4], 2048  }
   0xa   :  { %1753 = vsyncadd [#allocation4], 4294965248 }
   0xb   :  { %1754 = dma.done.wait [#allocation7], 4096  }
   0xc   :  { %1755 = vsyncadd [#allocation7], 4294963200  ;;  %v1391_v0 = vld [vmem:[#allocation3 + $0x60] sm:$0xf]  ;;  %v1563_v1 = vld [vmem:[#allocation3 + $0x6c] sm:$0xf0] }
   0xd   :  { %v1561_v2 = vld [vmem:[#allocation3 + $0x64] sm:$0xf]  ;;  %v1392_v3 = vor.u32 %v1563_v1, %v1391_v0  ;;  %v1393_v4 = vld [vmem:[#allocation3 + $0x70] sm:$0xf0]  ;;  %v1399_v5 = vld [vmem:[#allocation3 + $0x68] sm:$0xf] }
   0xe   :  { %v1564_v6 = vld [vmem:[#allocation3 + $0x74] sm:$0xf0]  ;;  %v1396_v7 = vor.u32 %v1561_v2, %v1393_v4  ;;  %v1562_v9 = vld [vmem:[#allocation3 + $0x6c] sm:$0xf]  ;;  %v1401_v10 = vld [vmem:[#allocation3 + $0x78] sm:$0xf0] }
   0xf   :  { %v1400_v8 = vor.u32 %v1564_v6, %v1399_v5  ;;  %v1375_v11 = vld [vmem:[#allocation3 + $0x40] sm:$0xf]  ;;  %175 = vmatpush.bf16.msra.mxu0 %v1392_v3  ;;  %v1404_v12 = vor.u32 %v1562_v9, %v1401_v10  ;;  %v1559_v13 = vld [vmem:[#allocation3 + $0x4c] sm:$0xf0]  ;;  %v1557_v14 = vld [vmem:[#allocation3 + $0x44] sm:$0xf] }
  0x10   :  { %v1377_v15 = vld [vmem:[#allocation3 + $0x50] sm:$0xf0]  ;;  %189 = vmatpush.bf16.msra.mxu1 %v1396_v7  ;;  %v1376_v16 = vor.u32 %v1559_v13, %v1375_v11  ;;  %v1383_v18 = vld [vmem:[#allocation3 + $0x48] sm:$0xf]  ;;  %v1560_v19 = vld [vmem:[#allocation3 + $0x54] sm:$0xf0] }
  0x11   :  { %203 = vmatpush.bf16.msra.mxu2 %v1400_v8  ;;  %v1380_v17 = vor.u32 %v1557_v14, %v1377_v15  ;;  %v1558_v20 = vld [vmem:[#allocation3 + $0x4c] sm:$0xf]  ;;  %217 = vmatpush.bf16.msra.mxu3 %v1404_v12  ;;  %v1384_v21 = vor.u32 %v1560_v19, %v1383_v18  ;;  %v1385_v22 = vld [vmem:[#allocation3 + $0x58] sm:$0xf0]  ;;  %v1359_v23 = vld [vmem:[#allocation3 + $0x20] sm:$0xf] }
  0x12   :  { %v1555_v24 = vld [vmem:[#allocation3 + $0x2c] sm:$0xf0]  ;;  %v1388_v25 = vor.u32 %v1558_v20, %v1385_v22  ;;  %v1553_v26 = vld [vmem:[#allocation3 + $0x24] sm:$0xf]  ;;  %v1361_v27 = vld [vmem:[#allocation3 + $0x30] sm:$0xf0] }
  0x13   :  { %v1367_v28 = vld [vmem:[#allocation3 + $0x28] sm:$0xf]  ;;  %176 = vmatpush.bf16.msra.mxu0 %v1376_v16  ;;  %v1360_v29 = vor.u32 %v1555_v24, %v1359_v23  ;;  %v1556_v30 = vld [vmem:[#allocation3 + $0x34] sm:$0xf0]  ;;  %v1554_v31 = vld [vmem:[#allocation3 + $0x2c] sm:$0xf]  ;;  %v1364_v33 = vor.u32 %v1553_v26, %v1361_v27 }
  0x14   :  { %v1369_v32 = vld [vmem:[#allocation3 + $0x38] sm:$0xf0]  ;;  %190 = vmatpush.bf16.msra.mxu1 %v1380_v17  ;;  %v1368_v34 = vor.u32 %v1556_v30, %v1367_v28  ;;  %v1343_v35 = vld [vmem:[#allocation3] sm:$0xf]  ;;  %v1551_v36 = vld [vmem:[#allocation3 + $0xc] sm:$0xf0] }
  0x15   :  { %204 = vmatpush.bf16.msra.mxu2 %v1384_v21  ;;  %v1549_v37 = vld [vmem:[#allocation3 + $0x4] sm:$0xf]  ;;  %218 = vmatpush.bf16.msra.mxu3 %v1388_v25  ;;  %v1372_v38 = vor.u32 %v1554_v31, %v1369_v32  ;;  %v1345_v39 = vld [vmem:[#allocation3 + $0x10] sm:$0xf0]  ;;  %v1351_v40 = vld [vmem:[#allocation3 + $0x8] sm:$0xf]  ;;  %v1344_v44 = vor.u32 %v1551_v36, %v1343_v35 }
  0x16   :  { %v1552_v41 = vld [vmem:[#allocation3 + $0x14] sm:$0xf0]  ;;  %v1550_v42 = vld [vmem:[#allocation3 + $0xc] sm:$0xf]  ;;  %v1353_v43 = vld [vmem:[#allocation3 + $0x18] sm:$0xf0]  ;;  %v1348_v45 = vor.u32 %v1549_v37, %v1345_v39 }
  0x17   :  { %177 = vmatpush.bf16.msra.mxu0 %v1360_v29  ;;  %v1352_v46 = vor.u32 %v1552_v41, %v1351_v40  ;;  %v1356_v47 = vor.u32 %v1550_v42, %v1353_v43  ;;  %v1548_v48 = vld [vmem:[%s2230_s0] sm:$0xff]  ;;  %vm167_vm0 = vcmask 523264   ;;  %v1595_v50 = vld [vmem:[#allocation6 + $0xec] sm:$0xf0]  ;;  %v1527_v53 = vld [vmem:[#allocation6 + $0xf0] sm:$0xf0] }
  0x18   :  { %191 = vmatpush.bf16.msra.mxu1 %v1364_v33  ;;  %v1525_v49 = vld [vmem:[#allocation6 + $0xe0] sm:$0xf]  ;;  %v1593_v51 = vld [vmem:[#allocation6 + $0xe4] sm:$0xf]  ;;  %v1533_v54 = vld [vmem:[#allocation6 + $0xe8] sm:$0xf] }
  0x19   :  { %205 = vmatpush.bf16.msra.mxu2 %v1368_v34  ;;  %219 = vmatpush.bf16.msra.mxu3 %v1372_v38  ;;  %v1808_v52 = vor.u32 %v1595_v50, %v1525_v49  ;;  %v1596_v55 = vld [vmem:[#allocation6 + $0xf4] sm:$0xf0]  ;;  %v1810_v56 = vor.u32 %v1593_v51, %v1527_v53  ;;  %v1594_v58 = vld [vmem:[#allocation6 + $0xec] sm:$0xf]  ;;  %v1535_v59 = vld [vmem:[#allocation6 + $0xf8] sm:$0xf0] }
  0x1a   :  { %v1812_v57 = vor.u32 %v1596_v55, %v1533_v54  ;;  %v1509_v60 = vld [vmem:[#allocation6 + $0xc0] sm:$0xf]  ;;  %v1815_v61 = vor.u32 %v1594_v58, %v1535_v59  ;;  %v1591_v62 = vld [vmem:[#allocation6 + $0xcc] sm:$0xf0]  ;;  %v1589_v63 = vld [vmem:[#allocation6 + $0xc4] sm:$0xf] }
  0x1b   :  { %178 = vmatpush.bf16.msra.mxu0 %v1344_v44  ;;  %v1511_v0 = vld [vmem:[#allocation6 + $0xd0] sm:$0xf0]  ;;  %v1819_v1 = vor.u32 %v1591_v62, %v1509_v60  ;;  %v1517_v3 = vld [vmem:[#allocation6 + $0xc8] sm:$0xf]  ;;  %v1592_v4 = vld [vmem:[#allocation6 + $0xd4] sm:$0xf0] }
  0x1c   :  { %192 = vmatpush.bf16.msra.mxu1 %v1348_v45  ;;  %v1821_v2 = vor.u32 %v1589_v63, %v1511_v0  ;;  %v1590_v5 = vld [vmem:[#allocation6 + $0xcc] sm:$0xf]  ;;  %v1826_v6 = vld [vmem:[%s2232_s2] sm:$0xf]  ;;  %v1829_v7 = vor.u32 %v1592_v4, %v1517_v3  ;;  %v1519_v8 = vld [vmem:[#allocation6 + $0xd8] sm:$0xf0] }
  0x1d   :  { %206 = vmatpush.bf16.msra.mxu2 %v1352_v46  ;;  %220 = vmatpush.bf16.msra.mxu3 %v1356_v47  ;;  %v1493_v9 = vld [vmem:[#allocation6 + $0xa0] sm:$0xf]  ;;  %v1587_v10 = vld [vmem:[#allocation6 + $0xac] sm:$0xf0]  ;;  %v1831_v11 = vor.u32 %v1590_v5, %v1519_v8  ;;  %v1585_v12 = vld [vmem:[#allocation6 + $0xa4] sm:$0xf] }
  0x1e   :  { %1405 = vmatmul.msk.bf16.vlgmr.msra.gmra.mxu0 %vm167_vm0, %v1548_v48  ;;  %v1495_v13 = vld [vmem:[#allocation6 + $0xb0] sm:$0xf0]  ;;  %v1501_v14 = vld [vmem:[#allocation6 + $0xa8] sm:$0xf]  ;;  %v1834_v15 = vor.u32 %v1587_v10, %v1493_v9  ;;  %v1588_v16 = vld [vmem:[#allocation6 + $0xb4] sm:$0xf0] }
  0x1f   :  { %1406 = vmatmul.msk.bf16.vlgmr.msra.gmra.mxu1 %vm167_vm0, %v1548_v48  ;;  %471 = vmatpush.bf16.msrb.mxu0 %v1808_v52  ;;  %v1586_v17 = vld [vmem:[#allocation6 + $0xac] sm:$0xf]  ;;  %v1503_v18 = vld [vmem:[#allocation6 + $0xb8] sm:$0xf0]  ;;  %v1838_v19 = vor.u32 %v1585_v12, %v1495_v13  ;;  %v1840_v20 = vor.u32 %v1588_v16, %v1501_v14  ;;  %v1477_v21 = vld [vmem:[#allocation6 + $0x80] sm:$0xf] }
  0x20   :  { %1407 = vmatmul.msk.bf16.vlgmr.msra.gmra.mxu2 %vm167_vm0, %v1548_v48  ;;  %1408 = vmatmul.msk.bf16.vlgmr.msra.gmra.mxu3 %vm167_vm0, %v1548_v48  ;;  %v1583_v22 = vld [vmem:[#allocation6 + $0x8c] sm:$0xf0]  ;;  %v1581_v23 = vld [vmem:[#allocation6 + $0x84] sm:$0xf]  ;;  %v1843_v24 = vor.u32 %v1586_v17, %v1503_v18  ;;  %v1479_v25 = vld [vmem:[#allocation6 + $0x90] sm:$0xf0] }
  0x21   :  { %484 = vmatpush.bf16.msrb.mxu1 %v1810_v56  ;;  %497 = vmatpush.bf16.msrb.mxu2 %v1812_v57  ;;  %v1485_v26 = vld [vmem:[#allocation6 + $0x88] sm:$0xf]  ;;  %v1584_v27 = vld [vmem:[#allocation6 + $0x94] sm:$0xf0]  ;;  %v74_v28 = vperm.slane %v1826_v6, 0  ;;  %v75_v31 = vperm.slane %v1826_v6, 1  ;;  %v1848_v32 = vor.u32 %v1583_v22, %v1477_v21  ;;  %v1852_v33 = vor.u32 %v1581_v23, %v1479_v25 }
  0x22   :  { %510 = vmatpush.bf16.msrb.mxu3 %v1815_v61  ;;  %v1582_v29 = vld [vmem:[#allocation6 + $0x8c] sm:$0xf]  ;;  %v1487_v30 = vld [vmem:[#allocation6 + $0x98] sm:$0xf0]  ;;  %v1854_v34 = vor.u32 %v1584_v27, %v1485_v26  ;;  %v1461_v35 = vld [vmem:[#allocation6 + $0x60] sm:$0xf] }
  0x23   :  { %472 = vmatpush.bf16.msrb.mxu0 %v1819_v1  ;;  %v1579_v36 = vld [vmem:[#allocation6 + $0x6c] sm:$0xf0]  ;;  %v1577_v37 = vld [vmem:[#allocation6 + $0x64] sm:$0xf]  ;;  %v1857_v39 = vor.u32 %v1582_v29, %v1487_v30  ;;  %v1463_v40 = vld [vmem:[#allocation6 + $0x70] sm:$0xf0] }
  0x24   :  { %v1469_v41 = vld [vmem:[#allocation6 + $0x68] sm:$0xf]  ;;  %v1580_v42 = vld [vmem:[#allocation6 + $0x74] sm:$0xf0]  ;;  %v1578_v45 = vld [vmem:[#allocation6 + $0x6c] sm:$0xf]  ;;  %v1864_v48 = vor.u32 %v1579_v36, %v1461_v35  ;;  %v1868_v51 = vor.u32 %v1577_v37, %v1463_v40 }
  0x25   :  { %485 = vmatpush.bf16.msrb.mxu1 %v1821_v2  ;;  %498 = vmatpush.bf16.msrb.mxu2 %v1829_v7  ;;  %v1471_v46 = vld [vmem:[#allocation6 + $0x78] sm:$0xf0]  ;;  %v1445_v49 = vld [vmem:[#allocation6 + $0x40] sm:$0xf]  ;;  %v1575_v50 = vld [vmem:[#allocation6 + $0x4c] sm:$0xf0]  ;;  %v1870_v53 = vor.u32 %v1580_v42, %v1469_v41 }
  0x26   :  { %511 = vmatpush.bf16.msrb.mxu3 %v1831_v11  ;;  %v1573_v54 = vld [vmem:[#allocation6 + $0x44] sm:$0xf]  ;;  %v1447_v55 = vld [vmem:[#allocation6 + $0x50] sm:$0xf0]  ;;  %v76_v58 = vperm.slane %v1826_v6, 2  ;;  %v1874_v59 = vor.u32 %v1578_v45, %v1471_v46  ;;  %v77_v63 = vperm.slane %v1826_v6, 3  ;;  %v1878_v4 = vor.u32 %v1575_v50, %v1445_v49 }
  0x27   :  { %473 = vmatpush.bf16.msrb.mxu0 %v1834_v15  ;;  %v1453_v60 = vld [vmem:[#allocation6 + $0x48] sm:$0xf]  ;;  %v1576_v62 = vld [vmem:[#allocation6 + $0x54] sm:$0xf0]  ;;  %v1574_v0 = vld [vmem:[#allocation6 + $0x4c] sm:$0xf]  ;;  %v1882_v8 = vor.u32 %v1573_v54, %v1447_v55 }
  0x28   :  { %v1455_v3 = vld [vmem:[#allocation6 + $0x58] sm:$0xf0]  ;;  %v1884_v9 = vor.u32 %v1576_v62, %v1453_v60  ;;  %v1429_v10 = vld [vmem:[#allocation6 + $0x20] sm:$0xf]  ;;  %v1571_v12 = vld [vmem:[#allocation6 + $0x2c] sm:$0xf0] }
  0x29   :  { %486 = vmatpush.bf16.msrb.mxu1 %v1838_v19  ;;  %499 = vmatpush.bf16.msrb.mxu2 %v1840_v20  ;;  %v1569_v13 = vld [vmem:[#allocation6 + $0x24] sm:$0xf]  ;;  %v1887_v18 = vor.u32 %v1574_v0, %v1455_v3  ;;  %v1431_v21 = vld [vmem:[#allocation6 + $0x30] sm:$0xf0]  ;;  %v1437_v22 = vld [vmem:[#allocation6 + $0x28] sm:$0xf]  ;;  %v1894_v36 = vor.u32 %v1571_v12, %v1429_v10 }
  0x2a   :  { %512 = vmatpush.bf16.msrb.mxu3 %v1843_v24  ;;  %v1572_v23 = vld [vmem:[#allocation6 + $0x34] sm:$0xf0]  ;;  %v1570_v29 = vld [vmem:[#allocation6 + $0x2c] sm:$0xf]  ;;  %v1439_v30 = vld [vmem:[#allocation6 + $0x38] sm:$0xf0]  ;;  %v1898_v40 = vor.u32 %v1569_v13, %v1431_v21 }
  0x2b   :  { %474 = vmatpush.bf16.msrb.mxu0 %v1848_v32  ;;  %v1413_v37 = vld [vmem:[#allocation6] sm:$0xf]  ;;  %v1565_v41 = vld [vmem:[#allocation6 + $0x4] sm:$0xf]  ;;  %v1415_v42 = vld [vmem:[#allocation6 + $0x10] sm:$0xf0]  ;;  %v1903_v6 = vor.u32 %v1570_v29, %v1439_v30 }
  0x2c   :  { %v1423_v45 = vld [vmem:[#allocation6 + $0x18] sm:$0xf0]  ;;  %v1910_v49 = vor.u32 %v1565_v41, %v1415_v42  ;;  %vm530_vm6 = vcmask 1040384   ;;  %vm532_vm7 = vcmask 1042434   ;;  %vm534_vm8 = vcmask 1041408   ;;  %s1763_s21 = smov 64  }
  0x2d   :  { %487 = vmatpush.bf16.msrb.mxu1 %v1852_v33  ;;  %500 = vmatpush.bf16.msrb.mxu2 %v1854_v34  ;;  %s1764_s24 = smov [#allocation8]   ;;  %s1326_s27 = sshll.u32 %s2235_s5, 4  ;;  %s1327_s27 = int_to_ptr.hbm [resolvable:$true] %s1326_s27 }
  0x2e   :  { %513 = vmatpush.bf16.msrb.mxu3 %v1857_v39  ;;  %s1324_s25 = sshll.u32 %s1764_s24, 4  ;;  %s1325_s25 = int_to_ptr.vmem [resolvable:$true] %s1324_s25 }
  0x2f   :  { %475 = vmatpush.bf16.msrb.mxu0 %v1864_v48 }
  0x31   :  { %488 = vmatpush.bf16.msrb.mxu1 %v1868_v51  ;;  %501 = vmatpush.bf16.msrb.mxu2 %v1870_v53 }
  0x32   :  { %514 = vmatpush.bf16.msrb.mxu3 %v1874_v59 }
  0x33   :  { %476 = vmatpush.bf16.msrb.mxu0 %v1878_v4 }
  0x35   :  { %489 = vmatpush.bf16.msrb.mxu1 %v1882_v8  ;;  %502 = vmatpush.bf16.msrb.mxu2 %v1884_v9 }
  0x36   :  { %515 = vmatpush.bf16.msrb.mxu3 %v1887_v18 }
  0x37   :  { %477 = vmatpush.bf16.msrb.mxu0 %v1894_v36 }
  0x39   :  { %490 = vmatpush.bf16.msrb.mxu1 %v1898_v40 }
  0x3a   :  { %516 = vmatpush.bf16.msrb.mxu3 %v1903_v6 }
  0x3d   :  { %491 = vmatpush.bf16.msrb.mxu1 %v1910_v49 }
  0x41   :  { %587 = vmatpush.bf16.msra.mxu1 %v1810_v56 }
  0x45   :  { %588 = vmatpush.bf16.msra.mxu1 %v1821_v2 }
  0x49   :  { %589 = vmatpush.bf16.msra.mxu1 %v1838_v19 }
  0x4d   :  { %590 = vmatpush.bf16.msra.mxu1 %v1852_v33 }
  0x51   :  { %591 = vmatpush.bf16.msra.mxu1 %v1868_v51 }
  0x55   :  { %592 = vmatpush.bf16.msra.mxu1 %v1882_v8 }
  0x59   :  { %593 = vmatpush.bf16.msra.mxu1 %v1898_v40 }
  0x5d   :  { %594 = vmatpush.bf16.msra.mxu1 %v1910_v49 }
  0x9b   :  { %v180_v38 = vpop.f32.mrf.mxu0 }
  0x9c   :  { %v181_v43 = vadd.f32 %v180_v38, %v74_v28  ;;  %v194_v44 = vpop.f32.mrf.mxu1  ;;  %v1567_v38 = vld [vmem:[#allocation6 + $0xc] sm:$0xf0] }
  0x9d   :  { %v195_v47 = vadd.f32 %v194_v44, %v75_v31  ;;  %v1566_v44 = vld [vmem:[#allocation6 + $0xc] sm:$0xf]  ;;  %v1906_v46 = vor.u32 %v1567_v38, %v1413_v37  ;;  %v1762_v38 = vmov 0.0  }
  0x9e   :  { %227 = vst [vmem:[#allocation2] sm:$0xff] %v181_v43  ;;  %v1568_v43 = vld [vmem:[#allocation6 + $0x14] sm:$0xf0]  ;;  %v1915_v60 = vor.u32 %v1566_v44, %v1423_v45 }
  0x9f   :  { %228 = vst [vmem:[#allocation2 + $0x8] sm:$0xff] %v195_v47  ;;  %478 = vmatpush.bf16.msrb.mxu0 %v1906_v46 }
  0xa0   :  { %517 = vmatpush.bf16.msrb.mxu3 %v1915_v60 }
  0xa3   :  { %v208_v5 = vpop.f32.mrf.mxu2  ;;  %v222_v16 = vpop.f32.mrf.mxu3  ;;  %574 = vmatpush.bf16.msra.mxu0 %v1808_v52 }
  0xa4   :  { %v209_v14 = vadd.f32 %v208_v5, %v76_v58  ;;  %v182_v17 = vpop.f32.mrf.mxu0  ;;  %v223_v25 = vadd.f32 %v222_v16, %v77_v63  ;;  %v196_v27 = vpop.f32.mrf.mxu1  ;;  %613 = vmatpush.bf16.msra.mxu3 %v1815_v61 }
  0xa5   :  { %v183_v26 = vadd.f32 %v182_v17, %v74_v28  ;;  %v197_v35 = vadd.f32 %v196_v27, %v75_v31  ;;  %v1900_v28 = vor.u32 %v1572_v23, %v1437_v22  ;;  %v1421_v31 = vld [vmem:[#allocation6 + $0x8] sm:$0xf] }
  0xa6   :  { %229 = vst [vmem:[#allocation2 + $0x10] sm:$0xff] %v209_v14  ;;  %v1912_v50 = vor.u32 %v1568_v43, %v1421_v31  ;;  %v269_v14 = vlaneseq }
  0xa7   :  { %230 = vst [vmem:[#allocation2 + $0x18] sm:$0xff] %v223_v25  ;;  %503 = vmatpush.bf16.msrb.mxu2 %v1900_v28  ;;  %575 = vmatpush.bf16.msra.mxu0 %v1819_v1 }
  0xa8   :  { %231 = vst [vmem:[#allocation2 + $0x20] sm:$0xff] %v183_v26  ;;  %614 = vmatpush.bf16.msra.mxu3 %v1831_v11  ;;  %v270_v23 = vand.u32 127, %v269_v14 }
  0xa9   :  { %232 = vst [vmem:[#allocation2 + $0x28] sm:$0xff] %v197_v35 }
  0xaa   :  { %vm271_vm5 = vcmp.lt.s32.totalorder %v270_v23, 64 }
  0xab   :  { %v210_v47 = vpop.f32.mrf.mxu2  ;;  %v224_v55 = vpop.f32.mrf.mxu3  ;;  %504 = vmatpush.bf16.msrb.mxu2 %v1912_v50  ;;  %576 = vmatpush.bf16.msra.mxu0 %v1834_v15  ;;  %v1410_v41 = vsel %vm271_vm5, 1.0, %v1762_v38 }
  0xac   :  { %v211_v54 = vadd.f32 %v210_v47, %v76_v58  ;;  %v225_v62 = vadd.f32 %v224_v55, %v77_v63  ;;  %615 = vmatpush.bf16.msra.mxu3 %v1843_v24 }
  0xae   :  { %233 = vst [vmem:[#allocation2 + $0x30] sm:$0xff] %v211_v54  ;;  %v235_v0 = vld [vmem:[#allocation2] ss:$8 sm:$0xf] }
  0xaf   :  { %234 = vst [vmem:[#allocation2 + $0x38] sm:$0xff] %v225_v62  ;;  %v1409_v3 = vmul.f32 -1.442695, %v235_v0  ;;  %600 = vmatpush.bf16.msra.mxu2 %v1812_v57  ;;  %577 = vmatpush.bf16.msra.mxu0 %v1848_v32  ;;  %v256_v12 = vrot.slane %v235_v0, 3 }
  0xb0   :  { %616 = vmatpush.bf16.msra.mxu3 %v1857_v39 }
  0xb1   :  { %1604 = vpow2.f32 %v1409_v3 }
  0xb3   :  { %601 = vmatpush.bf16.msra.mxu2 %v1829_v7  ;;  %578 = vmatpush.bf16.msra.mxu0 %v1864_v48 }
  0xb4   :  { %617 = vmatpush.bf16.msra.mxu3 %v1874_v59 }
  0xb7   :  { %v1605_v58 = vpop.eup %1604  ;;  %602 = vmatpush.bf16.msra.mxu2 %v1840_v20  ;;  %579 = vmatpush.bf16.msra.mxu0 %v1878_v4 }
  0xb8   :  { %v239_v63 = vadd.f32 1.0, %v1605_v58  ;;  %618 = vmatpush.bf16.msra.mxu3 %v1887_v18 }
  0xba   :  { %1606 = vrcp.f32 %v239_v63  ;;  %v251_v16 = vand.u32 2147483648, %v239_v63  ;;  %v249_v21 = vand.u32 2147483647, %v239_v63  ;;  %vm245_vm2 = vweird.f32 %v239_v63 }
  0xbb   :  { %603 = vmatpush.bf16.msra.mxu2 %v1854_v34  ;;  %1608 = vtanh.f32 %v256_v12  ;;  %580 = vmatpush.bf16.msra.mxu0 %v1894_v36 }
  0xbc   :  { %v252_v25 = vor.u32 1.1754944e-38, %v251_v16  ;;  %vm250_vm4 = vcmp.eq.f32.partialorder %v249_v21, 8.507059e+37  ;;  %619 = vmatpush.bf16.msra.mxu3 %v1903_v6  ;;  %v277_v16 = vld [vmem:[#allocation2 + $0x1] ss:$8 sm:$0xf] }
  0xbf   :  { %604 = vmatpush.bf16.msra.mxu2 %v1870_v53  ;;  %581 = vmatpush.bf16.msra.mxu0 %v1906_v46 }
  0xc0   :  { %v1607_v5 = vpop.eup %1606  ;;  %620 = vmatpush.bf16.msra.mxu3 %v1915_v60 }
  0xc1   :  { %v241_v10 = vmul.f32 %v1607_v5, %v239_v63  ;;  %vm246_vm1 = vweird.f32 %v1607_v5  ;;  %v1609_v30 = vpop.eup %1608 }
  0xc2   :  { %vm247_vm3 = vmor %vm245_vm2, %vm246_vm1 }
  0xc3   :  { %v242_v13 = vsub.f32 1.0, %v241_v10  ;;  %605 = vmatpush.bf16.msra.mxu2 %v1884_v9 }
  0xc5   :  { %v243_v17 = vmul.f32 %v1607_v5, %v242_v13 }
  0xc7   :  { %v244_v22 = vadd.f32 %v1607_v5, %v243_v17  ;;  %606 = vmatpush.bf16.msra.mxu2 %v1900_v28 }
  0xc9   :  { %v248_v26 = vsel %vm247_vm3, %v1607_v5, %v244_v22 }
  0xca   :  { %v253_v27 = vsel %vm250_vm4, %v252_v25, %v248_v26 }
  0xcb   :  { %v260_v29 = vrot.slane %v253_v27, 1  ;;  %v263_v37 = vmul.f32 %v1609_v30, %v253_v27  ;;  %607 = vmatpush.bf16.msra.mxu2 %v1912_v50  ;;  %v266_v43 = vrot.slane %v253_v27, 2 }
  0xcd   :  { %v262_v35 = vmul.f32 0.0, %v260_v29 }
  0xcf   :  { %v264_v42 = vadd.f32 %v263_v37, %v262_v35 }
  0xd1   :  { %1610 = vtanh.f32 %v264_v42  ;;  %v1953_v31 = vmul.f32 %v1410_v41, %v264_v42 }
  0xd7   :  { %v1611_v44 = vpop.eup %1610 }
  0xd8   :  { %v268_v45 = vmul.f32 %v1611_v44, %v266_v43 }
  0xda   :  { %v274_v47 = vmul.f32 %v1410_v41, %v268_v45 }
  0xdc   :  { %v278_v54 = vpack.c.bf16 %v274_v47, %v274_v47 }
  0xde   :  { %479 = vmatmul.bf16.vlgmr.msrb.gmra.mxu0 %v278_v54  ;;  %492 = vmatmul.bf16.vlgmr.msrb.gmra.mxu1 %v278_v54 }
  0xdf   :  { %505 = vmatmul.bf16.vlgmr.msrb.gmra.mxu2 %v278_v54  ;;  %518 = vmatmul.bf16.vlgmr.msrb.gmra.mxu3 %v278_v54 }
  0xe0   :  { %674 = vmatpush.bf16.msrb.mxu0 %v1808_v52  ;;  %687 = vmatpush.bf16.msrb.mxu1 %v1810_v56 }
  0xe1   :  { %700 = vmatpush.bf16.msrb.mxu2 %v1812_v57  ;;  %713 = vmatpush.bf16.msrb.mxu3 %v1815_v61 }
  0xe4   :  { %675 = vmatpush.bf16.msrb.mxu0 %v1819_v1  ;;  %688 = vmatpush.bf16.msrb.mxu1 %v1821_v2 }
  0xe5   :  { %701 = vmatpush.bf16.msrb.mxu2 %v1829_v7  ;;  %714 = vmatpush.bf16.msrb.mxu3 %v1831_v11 }
  0xe8   :  { %676 = vmatpush.bf16.msrb.mxu0 %v1834_v15  ;;  %689 = vmatpush.bf16.msrb.mxu1 %v1838_v19 }
  0xe9   :  { %702 = vmatpush.bf16.msrb.mxu2 %v1840_v20  ;;  %715 = vmatpush.bf16.msrb.mxu3 %v1843_v24 }
  0xec   :  { %677 = vmatpush.bf16.msrb.mxu0 %v1848_v32  ;;  %690 = vmatpush.bf16.msrb.mxu1 %v1852_v33 }
  0xed   :  { %703 = vmatpush.bf16.msrb.mxu2 %v1854_v34  ;;  %716 = vmatpush.bf16.msrb.mxu3 %v1857_v39 }
  0xf0   :  { %678 = vmatpush.bf16.msrb.mxu0 %v1864_v48  ;;  %691 = vmatpush.bf16.msrb.mxu1 %v1868_v51 }
  0xf1   :  { %704 = vmatpush.bf16.msrb.mxu2 %v1870_v53  ;;  %717 = vmatpush.bf16.msrb.mxu3 %v1874_v59 }
  0xf4   :  { %679 = vmatpush.bf16.msrb.mxu0 %v1878_v4  ;;  %692 = vmatpush.bf16.msrb.mxu1 %v1882_v8 }
  0xf5   :  { %705 = vmatpush.bf16.msrb.mxu2 %v1884_v9  ;;  %718 = vmatpush.bf16.msrb.mxu3 %v1887_v18 }
  0xf8   :  { %680 = vmatpush.bf16.msrb.mxu0 %v1894_v36  ;;  %693 = vmatpush.bf16.msrb.mxu1 %v1898_v40 }
  0xf9   :  { %706 = vmatpush.bf16.msrb.mxu2 %v1900_v28  ;;  %719 = vmatpush.bf16.msrb.mxu3 %v1903_v6 }
  0xfc   :  { %681 = vmatpush.bf16.msrb.mxu0 %v1906_v46  ;;  %694 = vmatpush.bf16.msrb.mxu1 %v1910_v49 }
  0xfd   :  { %707 = vmatpush.bf16.msrb.mxu2 %v1912_v50  ;;  %720 = vmatpush.bf16.msrb.mxu3 %v1915_v60 }
 0x15b   :  { %v480_v55 = vpop.f32.mrf.mxu0  ;;  %v493_v62 = vpop.f32.mrf.mxu1 }
 0x15c   :  { %v527_v0 = vrot.slane %v493_v62, 7 }
 0x15e   :  { %v531_v13 = vsel %vm530_vm6, %v480_v55, %v527_v0 }
 0x162   :  { %v506_v3 = vpop.f32.mrf.mxu2  ;;  %v519_v58 = vpop.f32.mrf.mxu3 }
 0x163   :  { %v528_v63 = vrot.slane %v506_v3, 6  ;;  %v529_v5 = vrot.slane %v519_v58, 5  ;;  %v482_v10 = vpop.f32.mrf.mxu0  ;;  %v495_v12 = vpop.f32.mrf.mxu1 }
 0x165   :  { %v533_v14 = vsel %vm532_vm7, %v528_v63, %v529_v5 }
 0x166   :  { %v535_v17 = vsel %vm534_vm8, %v531_v13, %v533_v14 }
 0x167   :  { %v537_v21 = vadd.f32 %v535_v17, %v277_v16 }
 0x169   :  { %v1539_v22 = vmul.f32 -1.442695, %v537_v21  ;;  %v558_v35 = vrot.slane %v537_v21, 3 }
 0x16a   :  { %v508_v23 = vpop.f32.mrf.mxu2  ;;  %v521_v25 = vpop.f32.mrf.mxu3 }
 0x16b   :  { %1612 = vpow2.f32 %v1539_v22 }
 0x171   :  { %v1613_v26 = vpop.eup %1612 }
 0x172   :  { %v541_v27 = vadd.f32 1.0, %v1613_v26 }
 0x174   :  { %1614 = vrcp.f32 %v541_v27  ;;  %v553_v38 = vand.u32 2147483648, %v541_v27  ;;  %v551_v42 = vand.u32 2147483647, %v541_v27  ;;  %vm547_vm10 = vweird.f32 %v541_v27 }
 0x175   :  { %1616 = vtanh.f32 %v558_v35 }
 0x176   :  { %v554_v44 = vor.u32 1.1754944e-38, %v553_v38  ;;  %vm552_vm12 = vcmp.eq.f32.partialorder %v551_v42, 8.507059e+37 }
 0x17a   :  { %v1615_v29 = vpop.eup %1614 }
 0x17b   :  { %v543_v30 = vmul.f32 %v1615_v29, %v541_v27  ;;  %vm548_vm9 = vweird.f32 %v1615_v29  ;;  %v1617_v55 = vpop.eup %1616  ;;  %v572_v27 = vld [vmem:[#allocation2 + $0x2] ss:$8 sm:$0xf] }
 0x17c   :  { %vm549_vm11 = vmor %vm547_vm10, %vm548_vm9 }
 0x17d   :  { %v544_v37 = vsub.f32 1.0, %v543_v30 }
 0x17f   :  { %v545_v41 = vmul.f32 %v1615_v29, %v544_v37 }
 0x181   :  { %v546_v43 = vadd.f32 %v1615_v29, %v545_v41 }
 0x183   :  { %v550_v45 = vsel %vm549_vm11, %v1615_v29, %v546_v43 }
 0x184   :  { %v555_v47 = vsel %vm552_vm12, %v554_v44, %v550_v45 }
 0x185   :  { %v562_v54 = vrot.slane %v555_v47, 1  ;;  %v565_v0 = vmul.f32 %v1617_v55, %v555_v47  ;;  %v568_v58 = vrot.slane %v555_v47, 2 }
 0x187   :  { %v564_v62 = vmul.f32 %v562_v54, %v1953_v31 }
 0x189   :  { %v1991_v3 = vadd.f32 %v565_v0, %v564_v62 }
 0x18b   :  { %1618 = vtanh.f32 %v1991_v3 }
 0x191   :  { %v1619_v63 = vpop.eup %1618 }
 0x192   :  { %v570_v5 = vmul.f32 %v1619_v63, %v568_v58 }
 0x194   :  { %v573_v10 = vpack.c.bf16 %v570_v5, %v570_v5 }
 0x196   :  { %582 = vmatmul.bf16.vlgmr.msra.gmra.mxu0 %v573_v10  ;;  %595 = vmatmul.bf16.vlgmr.msra.gmra.mxu1 %v573_v10 }
 0x197   :  { %608 = vmatmul.bf16.vlgmr.msra.gmra.mxu2 %v573_v10  ;;  %621 = vmatmul.bf16.vlgmr.msra.gmra.mxu3 %v573_v10 }
 0x198   :  { %774 = vmatpush.bf16.msra.mxu0 %v1808_v52  ;;  %787 = vmatpush.bf16.msra.mxu1 %v1810_v56 }
 0x199   :  { %800 = vmatpush.bf16.msra.mxu2 %v1812_v57  ;;  %813 = vmatpush.bf16.msra.mxu3 %v1815_v61 }
 0x19c   :  { %775 = vmatpush.bf16.msra.mxu0 %v1819_v1  ;;  %788 = vmatpush.bf16.msra.mxu1 %v1821_v2 }
 0x19d   :  { %801 = vmatpush.bf16.msra.mxu2 %v1829_v7  ;;  %814 = vmatpush.bf16.msra.mxu3 %v1831_v11 }
 0x1a0   :  { %776 = vmatpush.bf16.msra.mxu0 %v1834_v15  ;;  %789 = vmatpush.bf16.msra.mxu1 %v1838_v19 }
 0x1a1   :  { %802 = vmatpush.bf16.msra.mxu2 %v1840_v20  ;;  %815 = vmatpush.bf16.msra.mxu3 %v1843_v24 }
 0x1a4   :  { %777 = vmatpush.bf16.msra.mxu0 %v1848_v32  ;;  %790 = vmatpush.bf16.msra.mxu1 %v1852_v33 }
 0x1a5   :  { %803 = vmatpush.bf16.msra.mxu2 %v1854_v34  ;;  %816 = vmatpush.bf16.msra.mxu3 %v1857_v39 }
 0x1a8   :  { %778 = vmatpush.bf16.msra.mxu0 %v1864_v48  ;;  %791 = vmatpush.bf16.msra.mxu1 %v1868_v51 }
 0x1a9   :  { %804 = vmatpush.bf16.msra.mxu2 %v1870_v53  ;;  %817 = vmatpush.bf16.msra.mxu3 %v1874_v59 }
 0x1ac   :  { %779 = vmatpush.bf16.msra.mxu0 %v1878_v4  ;;  %792 = vmatpush.bf16.msra.mxu1 %v1882_v8 }
 0x1ad   :  { %805 = vmatpush.bf16.msra.mxu2 %v1884_v9  ;;  %818 = vmatpush.bf16.msra.mxu3 %v1887_v18 }
 0x1b0   :  { %780 = vmatpush.bf16.msra.mxu0 %v1894_v36  ;;  %793 = vmatpush.bf16.msra.mxu1 %v1898_v40 }
 0x1b1   :  { %806 = vmatpush.bf16.msra.mxu2 %v1900_v28  ;;  %819 = vmatpush.bf16.msra.mxu3 %v1903_v6 }
 0x1b4   :  { %781 = vmatpush.bf16.msra.mxu0 %v1906_v46  ;;  %794 = vmatpush.bf16.msra.mxu1 %v1910_v49 }
 0x1b5   :  { %807 = vmatpush.bf16.msra.mxu2 %v1912_v50  ;;  %820 = vmatpush.bf16.msra.mxu3 %v1915_v60 }
 0x213   :  { %v583_v31 = vpop.f32.mrf.mxu0  ;;  %v596_v12 = vpop.f32.mrf.mxu1 }
 0x214   :  { %v630_v13 = vrot.slane %v596_v12, 7 }
 0x216   :  { %v633_v25 = vsel %vm530_vm6, %v583_v31, %v630_v13 }
 0x21a   :  { %v609_v14 = vpop.f32.mrf.mxu2  ;;  %v622_v16 = vpop.f32.mrf.mxu3 }
 0x21b   :  { %v631_v17 = vrot.slane %v609_v14, 6  ;;  %v632_v21 = vrot.slane %v622_v16, 5  ;;  %v585_v22 = vpop.f32.mrf.mxu0  ;;  %v598_v23 = vpop.f32.mrf.mxu1 }
 0x21d   :  { %v634_v26 = vsel %vm532_vm7, %v631_v17, %v632_v21 }
 0x21e   :  { %v635_v29 = vsel %vm534_vm8, %v633_v25, %v634_v26 }
 0x21f   :  { %v637_v30 = vadd.f32 %v635_v29, %v572_v27 }
 0x221   :  { %v1540_v35 = vmul.f32 -1.442695, %v637_v30  ;;  %v658_v45 = vrot.slane %v637_v30, 3 }
 0x222   :  { %v611_v37 = vpop.f32.mrf.mxu2  ;;  %v624_v38 = vpop.f32.mrf.mxu3 }
 0x223   :  { %1620 = vpow2.f32 %v1540_v35 }
 0x229   :  { %v1621_v41 = vpop.eup %1620 }
 0x22a   :  { %v641_v42 = vadd.f32 1.0, %v1621_v41 }
 0x22c   :  { %1622 = vrcp.f32 %v641_v42  ;;  %v653_v54 = vand.u32 2147483648, %v641_v42  ;;  %v651_v62 = vand.u32 2147483647, %v641_v42  ;;  %vm647_vm14 = vweird.f32 %v641_v42 }
 0x22d   :  { %1624 = vtanh.f32 %v658_v45 }
 0x22e   :  { %v654_v58 = vor.u32 1.1754944e-38, %v653_v54  ;;  %vm652_vm1 = vcmp.eq.f32.partialorder %v651_v62, 8.507059e+37 }
 0x232   :  { %v1623_v43 = vpop.eup %1622 }
 0x233   :  { %v643_v44 = vmul.f32 %v1623_v43, %v641_v42  ;;  %vm648_vm13 = vweird.f32 %v1623_v43  ;;  %v1625_v31 = vpop.eup %1624  ;;  %v672_v42 = vld [vmem:[#allocation2 + $0x3] ss:$8 sm:$0xf] }
 0x234   :  { %vm649_vm15 = vmor %vm647_vm14, %vm648_vm13 }
 0x235   :  { %v644_v47 = vsub.f32 1.0, %v643_v44 }
 0x237   :  { %v645_v55 = vmul.f32 %v1623_v43, %v644_v47 }
 0x239   :  { %v646_v0 = vadd.f32 %v1623_v43, %v645_v55 }
 0x23b   :  { %v650_v63 = vsel %vm649_vm15, %v1623_v43, %v646_v0 }
 0x23c   :  { %v655_v5 = vsel %vm652_vm1, %v654_v58, %v650_v63 }
 0x23d   :  { %v662_v10 = vrot.slane %v655_v5, 1  ;;  %v665_v13 = vmul.f32 %v1625_v31, %v655_v5  ;;  %v668_v16 = vrot.slane %v655_v5, 2 }
 0x23f   :  { %v664_v12 = vmul.f32 %v662_v10, %v1991_v3 }
 0x241   :  { %v2030_v14 = vadd.f32 %v665_v13, %v664_v12 }
 0x243   :  { %1626 = vtanh.f32 %v2030_v14 }
 0x249   :  { %v1627_v17 = vpop.eup %1626 }
 0x24a   :  { %v670_v21 = vmul.f32 %v1627_v17, %v668_v16 }
 0x24c   :  { %v673_v22 = vpack.c.bf16 %v670_v21, %v670_v21 }
 0x24e   :  { %682 = vmatmul.bf16.vlgmr.msrb.gmra.mxu0 %v673_v22  ;;  %695 = vmatmul.bf16.vlgmr.msrb.gmra.mxu1 %v673_v22 }
 0x24f   :  { %708 = vmatmul.bf16.vlgmr.msrb.gmra.mxu2 %v673_v22  ;;  %721 = vmatmul.bf16.vlgmr.msrb.gmra.mxu3 %v673_v22 }
 0x250   :  { %874 = vmatpush.bf16.msrb.mxu0 %v1808_v52  ;;  %887 = vmatpush.bf16.msrb.mxu1 %v1810_v56 }
 0x251   :  { %900 = vmatpush.bf16.msrb.mxu2 %v1812_v57  ;;  %913 = vmatpush.bf16.msrb.mxu3 %v1815_v61 }
 0x254   :  { %875 = vmatpush.bf16.msrb.mxu0 %v1819_v1  ;;  %888 = vmatpush.bf16.msrb.mxu1 %v1821_v2 }
 0x255   :  { %901 = vmatpush.bf16.msrb.mxu2 %v1829_v7  ;;  %914 = vmatpush.bf16.msrb.mxu3 %v1831_v11 }
 0x258   :  { %876 = vmatpush.bf16.msrb.mxu0 %v1834_v15  ;;  %889 = vmatpush.bf16.msrb.mxu1 %v1838_v19 }
 0x259   :  { %902 = vmatpush.bf16.msrb.mxu2 %v1840_v20  ;;  %915 = vmatpush.bf16.msrb.mxu3 %v1843_v24 }
 0x25c   :  { %877 = vmatpush.bf16.msrb.mxu0 %v1848_v32  ;;  %890 = vmatpush.bf16.msrb.mxu1 %v1852_v33 }
 0x25d   :  { %903 = vmatpush.bf16.msrb.mxu2 %v1854_v34  ;;  %916 = vmatpush.bf16.msrb.mxu3 %v1857_v39 }
 0x260   :  { %878 = vmatpush.bf16.msrb.mxu0 %v1864_v48  ;;  %891 = vmatpush.bf16.msrb.mxu1 %v1868_v51 }
 0x261   :  { %904 = vmatpush.bf16.msrb.mxu2 %v1870_v53  ;;  %917 = vmatpush.bf16.msrb.mxu3 %v1874_v59 }
 0x264   :  { %879 = vmatpush.bf16.msrb.mxu0 %v1878_v4  ;;  %892 = vmatpush.bf16.msrb.mxu1 %v1882_v8 }
 0x265   :  { %905 = vmatpush.bf16.msrb.mxu2 %v1884_v9  ;;  %918 = vmatpush.bf16.msrb.mxu3 %v1887_v18 }
 0x268   :  { %880 = vmatpush.bf16.msrb.mxu0 %v1894_v36  ;;  %893 = vmatpush.bf16.msrb.mxu1 %v1898_v40 }
 0x269   :  { %906 = vmatpush.bf16.msrb.mxu2 %v1900_v28  ;;  %919 = vmatpush.bf16.msrb.mxu3 %v1903_v6 }
 0x26c   :  { %881 = vmatpush.bf16.msrb.mxu0 %v1906_v46  ;;  %894 = vmatpush.bf16.msrb.mxu1 %v1910_v49 }
 0x26d   :  { %907 = vmatpush.bf16.msrb.mxu2 %v1912_v50  ;;  %920 = vmatpush.bf16.msrb.mxu3 %v1915_v60 }
 0x2cb   :  { %v683_v3 = vpop.f32.mrf.mxu0  ;;  %v696_v23 = vpop.f32.mrf.mxu1 }
 0x2cc   :  { %v730_v25 = vrot.slane %v696_v23, 7 }
 0x2ce   :  { %v733_v38 = vsel %vm530_vm6, %v683_v3, %v730_v25 }
 0x2d2   :  { %v709_v26 = vpop.f32.mrf.mxu2  ;;  %v722_v27 = vpop.f32.mrf.mxu3 }
 0x2d3   :  { %v731_v29 = vrot.slane %v709_v26, 6  ;;  %v732_v30 = vrot.slane %v722_v27, 5  ;;  %v685_v35 = vpop.f32.mrf.mxu0  ;;  %v698_v37 = vpop.f32.mrf.mxu1 }
 0x2d5   :  { %v734_v41 = vsel %vm532_vm7, %v731_v29, %v732_v30 }
 0x2d6   :  { %v735_v43 = vsel %vm534_vm8, %v733_v38, %v734_v41 }
 0x2d7   :  { %v737_v44 = vadd.f32 %v735_v43, %v672_v42 }
 0x2d9   :  { %v1541_v45 = vmul.f32 -1.442695, %v737_v44  ;;  %v758_v63 = vrot.slane %v737_v44, 3 }
 0x2da   :  { %v711_v47 = vpop.f32.mrf.mxu2  ;;  %v724_v54 = vpop.f32.mrf.mxu3 }
 0x2db   :  { %1628 = vpow2.f32 %v1541_v45 }
 0x2e1   :  { %v1629_v55 = vpop.eup %1628 }
 0x2e2   :  { %v741_v62 = vadd.f32 1.0, %v1629_v55 }
 0x2e4   :  { %1630 = vrcp.f32 %v741_v62  ;;  %v753_v10 = vand.u32 2147483648, %v741_v62  ;;  %v751_v12 = vand.u32 2147483647, %v741_v62  ;;  %vm747_vm3 = vweird.f32 %v741_v62 }
 0x2e5   :  { %1632 = vtanh.f32 %v758_v63 }
 0x2e6   :  { %v754_v16 = vor.u32 1.1754944e-38, %v753_v10  ;;  %vm752_vm5 = vcmp.eq.f32.partialorder %v751_v12, 8.507059e+37 }
 0x2ea   :  { %v1631_v0 = vpop.eup %1630 }
 0x2eb   :  { %v743_v58 = vmul.f32 %v1631_v0, %v741_v62  ;;  %vm748_vm2 = vweird.f32 %v1631_v0  ;;  %v1633_v3 = vpop.eup %1632  ;;  %v772_v62 = vld [vmem:[#allocation2 + $0x4] ss:$8 sm:$0xf] }
 0x2ec   :  { %vm749_vm4 = vmor %vm747_vm3, %vm748_vm2 }
 0x2ed   :  { %v744_v5 = vsub.f32 1.0, %v743_v58 }
 0x2ef   :  { %v745_v31 = vmul.f32 %v1631_v0, %v744_v5 }
 0x2f1   :  { %v746_v13 = vadd.f32 %v1631_v0, %v745_v31 }
 0x2f3   :  { %v750_v17 = vsel %vm749_vm4, %v1631_v0, %v746_v13 }
 0x2f4   :  { %v755_v21 = vsel %vm752_vm5, %v754_v16, %v750_v17 }
 0x2f5   :  { %v762_v22 = vrot.slane %v755_v21, 1  ;;  %v765_v25 = vmul.f32 %v1633_v3, %v755_v21  ;;  %v768_v27 = vrot.slane %v755_v21, 2 }
 0x2f7   :  { %v764_v23 = vmul.f32 %v762_v22, %v2030_v14 }
 0x2f9   :  { %v2069_v26 = vadd.f32 %v765_v25, %v764_v23 }
 0x2fb   :  { %1634 = vtanh.f32 %v2069_v26 }
 0x301   :  { %v1635_v29 = vpop.eup %1634 }
 0x302   :  { %v770_v30 = vmul.f32 %v1635_v29, %v768_v27 }
 0x304   :  { %v773_v35 = vpack.c.bf16 %v770_v30, %v770_v30 }
 0x306   :  { %782 = vmatmul.bf16.vlgmr.msra.gmra.mxu0 %v773_v35  ;;  %795 = vmatmul.bf16.vlgmr.msra.gmra.mxu1 %v773_v35 }
 0x307   :  { %808 = vmatmul.bf16.vlgmr.msra.gmra.mxu2 %v773_v35  ;;  %821 = vmatmul.bf16.vlgmr.msra.gmra.mxu3 %v773_v35 }
 0x308   :  { %974 = vmatpush.bf16.msra.mxu0 %v1808_v52  ;;  %987 = vmatpush.bf16.msra.mxu1 %v1810_v56 }
 0x309   :  { %1000 = vmatpush.bf16.msra.mxu2 %v1812_v57  ;;  %1013 = vmatpush.bf16.msra.mxu3 %v1815_v61 }
 0x30c   :  { %975 = vmatpush.bf16.msra.mxu0 %v1819_v1  ;;  %988 = vmatpush.bf16.msra.mxu1 %v1821_v2 }
 0x30d   :  { %1001 = vmatpush.bf16.msra.mxu2 %v1829_v7  ;;  %1014 = vmatpush.bf16.msra.mxu3 %v1831_v11 }
 0x310   :  { %976 = vmatpush.bf16.msra.mxu0 %v1834_v15  ;;  %989 = vmatpush.bf16.msra.mxu1 %v1838_v19 }
 0x311   :  { %1002 = vmatpush.bf16.msra.mxu2 %v1840_v20  ;;  %1015 = vmatpush.bf16.msra.mxu3 %v1843_v24 }
 0x314   :  { %977 = vmatpush.bf16.msra.mxu0 %v1848_v32  ;;  %990 = vmatpush.bf16.msra.mxu1 %v1852_v33 }
 0x315   :  { %1003 = vmatpush.bf16.msra.mxu2 %v1854_v34  ;;  %1016 = vmatpush.bf16.msra.mxu3 %v1857_v39 }
 0x318   :  { %978 = vmatpush.bf16.msra.mxu0 %v1864_v48  ;;  %991 = vmatpush.bf16.msra.mxu1 %v1868_v51 }
 0x319   :  { %1004 = vmatpush.bf16.msra.mxu2 %v1870_v53  ;;  %1017 = vmatpush.bf16.msra.mxu3 %v1874_v59 }
 0x31c   :  { %979 = vmatpush.bf16.msra.mxu0 %v1878_v4  ;;  %992 = vmatpush.bf16.msra.mxu1 %v1882_v8 }
 0x31d   :  { %1005 = vmatpush.bf16.msra.mxu2 %v1884_v9  ;;  %1018 = vmatpush.bf16.msra.mxu3 %v1887_v18 }
 0x320   :  { %980 = vmatpush.bf16.msra.mxu0 %v1894_v36  ;;  %993 = vmatpush.bf16.msra.mxu1 %v1898_v40 }
 0x321   :  { %1006 = vmatpush.bf16.msra.mxu2 %v1900_v28  ;;  %1019 = vmatpush.bf16.msra.mxu3 %v1903_v6 }
 0x324   :  { %981 = vmatpush.bf16.msra.mxu0 %v1906_v46  ;;  %994 = vmatpush.bf16.msra.mxu1 %v1910_v49 }
 0x325   :  { %1007 = vmatpush.bf16.msra.mxu2 %v1912_v50  ;;  %1020 = vmatpush.bf16.msra.mxu3 %v1915_v60 }
 0x383   :  { %v783_v14 = vpop.f32.mrf.mxu0  ;;  %v796_v37 = vpop.f32.mrf.mxu1 }
 0x384   :  { %v830_v38 = vrot.slane %v796_v37, 7 }
 0x386   :  { %v833_v54 = vsel %vm530_vm6, %v783_v14, %v830_v38 }
 0x38a   :  { %v809_v41 = vpop.f32.mrf.mxu2  ;;  %v822_v42 = vpop.f32.mrf.mxu3 }
 0x38b   :  { %v831_v43 = vrot.slane %v809_v41, 6  ;;  %v832_v44 = vrot.slane %v822_v42, 5  ;;  %v785_v45 = vpop.f32.mrf.mxu0  ;;  %v798_v47 = vpop.f32.mrf.mxu1 }
 0x38d   :  { %v834_v55 = vsel %vm532_vm7, %v831_v43, %v832_v44 }
 0x38e   :  { %v835_v0 = vsel %vm534_vm8, %v833_v54, %v834_v55 }
 0x38f   :  { %v837_v58 = vadd.f32 %v835_v0, %v772_v62 }
 0x391   :  { %v1542_v63 = vmul.f32 -1.442695, %v837_v58  ;;  %v858_v17 = vrot.slane %v837_v58, 3 }
 0x392   :  { %v811_v5 = vpop.f32.mrf.mxu2  ;;  %v824_v10 = vpop.f32.mrf.mxu3 }
 0x393   :  { %1636 = vpow2.f32 %v1542_v63 }
 0x399   :  { %v1637_v31 = vpop.eup %1636 }
 0x39a   :  { %v841_v12 = vadd.f32 1.0, %v1637_v31 }
 0x39c   :  { %1638 = vrcp.f32 %v841_v12  ;;  %v853_v22 = vand.u32 2147483648, %v841_v12  ;;  %v851_v23 = vand.u32 2147483647, %v841_v12  ;;  %vm847_vm10 = vweird.f32 %v841_v12 }
 0x39d   :  { %1640 = vtanh.f32 %v858_v17 }
 0x39e   :  { %v854_v27 = vor.u32 1.1754944e-38, %v853_v22  ;;  %vm852_vm12 = vcmp.eq.f32.partialorder %v851_v23, 8.507059e+37 }
 0x3a2   :  { %v1639_v13 = vpop.eup %1638 }
 0x3a3   :  { %v843_v16 = vmul.f32 %v1639_v13, %v841_v12  ;;  %vm848_vm9 = vweird.f32 %v1639_v13  ;;  %v1641_v14 = vpop.eup %1640  ;;  %v872_v12 = vld [vmem:[#allocation2 + $0x5] ss:$8 sm:$0xf] }
 0x3a4   :  { %vm849_vm11 = vmor %vm847_vm10, %vm848_vm9 }
 0x3a5   :  { %v844_v21 = vsub.f32 1.0, %v843_v16 }
 0x3a7   :  { %v845_v3 = vmul.f32 %v1639_v13, %v844_v21 }
 0x3a9   :  { %v846_v25 = vadd.f32 %v1639_v13, %v845_v3 }
 0x3ab   :  { %v850_v29 = vsel %vm849_vm11, %v1639_v13, %v846_v25 }
 0x3ac   :  { %v855_v30 = vsel %vm852_vm12, %v854_v27, %v850_v29 }
 0x3ad   :  { %v862_v35 = vrot.slane %v855_v30, 1  ;;  %v865_v38 = vmul.f32 %v1641_v14, %v855_v30  ;;  %v868_v42 = vrot.slane %v855_v30, 2 }
 0x3af   :  { %v864_v37 = vmul.f32 %v862_v35, %v2069_v26 }
 0x3b1   :  { %v2108_v41 = vadd.f32 %v865_v38, %v864_v37 }
 0x3b3   :  { %1642 = vtanh.f32 %v2108_v41 }
 0x3b9   :  { %v1643_v43 = vpop.eup %1642 }
 0x3ba   :  { %v870_v44 = vmul.f32 %v1643_v43, %v868_v42 }
 0x3bc   :  { %v873_v45 = vpack.c.bf16 %v870_v44, %v870_v44 }
 0x3be   :  { %882 = vmatmul.bf16.vlgmr.msrb.gmra.mxu0 %v873_v45  ;;  %895 = vmatmul.bf16.vlgmr.msrb.gmra.mxu1 %v873_v45 }
 0x3bf   :  { %908 = vmatmul.bf16.vlgmr.msrb.gmra.mxu2 %v873_v45  ;;  %921 = vmatmul.bf16.vlgmr.msrb.gmra.mxu3 %v873_v45 }
 0x3c0   :  { %1074 = vmatpush.bf16.msrb.mxu0 %v1808_v52  ;;  %1087 = vmatpush.bf16.msrb.mxu1 %v1810_v56 }
 0x3c1   :  { %1100 = vmatpush.bf16.msrb.mxu2 %v1812_v57  ;;  %1113 = vmatpush.bf16.msrb.mxu3 %v1815_v61 }
 0x3c4   :  { %1075 = vmatpush.bf16.msrb.mxu0 %v1819_v1  ;;  %1088 = vmatpush.bf16.msrb.mxu1 %v1821_v2 }
 0x3c5   :  { %1101 = vmatpush.bf16.msrb.mxu2 %v1829_v7  ;;  %1114 = vmatpush.bf16.msrb.mxu3 %v1831_v11 }
 0x3c8   :  { %1076 = vmatpush.bf16.msrb.mxu0 %v1834_v15  ;;  %1089 = vmatpush.bf16.msrb.mxu1 %v1838_v19 }
 0x3c9   :  { %1102 = vmatpush.bf16.msrb.mxu2 %v1840_v20  ;;  %1115 = vmatpush.bf16.msrb.mxu3 %v1843_v24 }
 0x3cc   :  { %1077 = vmatpush.bf16.msrb.mxu0 %v1848_v32  ;;  %1090 = vmatpush.bf16.msrb.mxu1 %v1852_v33 }
 0x3cd   :  { %1103 = vmatpush.bf16.msrb.mxu2 %v1854_v34  ;;  %1116 = vmatpush.bf16.msrb.mxu3 %v1857_v39 }
 0x3d0   :  { %1078 = vmatpush.bf16.msrb.mxu0 %v1864_v48  ;;  %1091 = vmatpush.bf16.msrb.mxu1 %v1868_v51 }
 0x3d1   :  { %1104 = vmatpush.bf16.msrb.mxu2 %v1870_v53  ;;  %1117 = vmatpush.bf16.msrb.mxu3 %v1874_v59 }
 0x3d4   :  { %1079 = vmatpush.bf16.msrb.mxu0 %v1878_v4  ;;  %1092 = vmatpush.bf16.msrb.mxu1 %v1882_v8 }
 0x3d5   :  { %1105 = vmatpush.bf16.msrb.mxu2 %v1884_v9  ;;  %1118 = vmatpush.bf16.msrb.mxu3 %v1887_v18 }
 0x3d8   :  { %1080 = vmatpush.bf16.msrb.mxu0 %v1894_v36  ;;  %1093 = vmatpush.bf16.msrb.mxu1 %v1898_v40 }
 0x3d9   :  { %1106 = vmatpush.bf16.msrb.mxu2 %v1900_v28  ;;  %1119 = vmatpush.bf16.msrb.mxu3 %v1903_v6 }
 0x3dc   :  { %1081 = vmatpush.bf16.msrb.mxu0 %v1906_v46  ;;  %1094 = vmatpush.bf16.msrb.mxu1 %v1910_v49 }
 0x3dd   :  { %1107 = vmatpush.bf16.msrb.mxu2 %v1912_v50  ;;  %1120 = vmatpush.bf16.msrb.mxu3 %v1915_v60 }
 0x43b   :  { %v883_v26 = vpop.f32.mrf.mxu0  ;;  %v896_v47 = vpop.f32.mrf.mxu1 }
 0x43c   :  { %v930_v54 = vrot.slane %v896_v47, 7 }
 0x43e   :  { %v933_v10 = vsel %vm530_vm6, %v883_v26, %v930_v54 }
 0x442   :  { %v909_v55 = vpop.f32.mrf.mxu2  ;;  %v922_v62 = vpop.f32.mrf.mxu3 }
 0x443   :  { %v931_v0 = vrot.slane %v909_v55, 6  ;;  %v932_v58 = vrot.slane %v922_v62, 5  ;;  %v885_v63 = vpop.f32.mrf.mxu0  ;;  %v898_v5 = vpop.f32.mrf.mxu1 }
 0x445   :  { %v934_v31 = vsel %vm532_vm7, %v931_v0, %v932_v58 }
 0x446   :  { %v935_v13 = vsel %vm534_vm8, %v933_v10, %v934_v31 }
 0x447   :  { %v937_v16 = vadd.f32 %v935_v13, %v872_v12 }
 0x449   :  { %v1543_v17 = vmul.f32 -1.442695, %v937_v16  ;;  %v958_v29 = vrot.slane %v937_v16, 3 }
 0x44a   :  { %v911_v21 = vpop.f32.mrf.mxu2  ;;  %v924_v22 = vpop.f32.mrf.mxu3 }
 0x44b   :  { %1644 = vpow2.f32 %v1543_v17 }
 0x451   :  { %v1645_v3 = vpop.eup %1644 }
 0x452   :  { %v941_v23 = vadd.f32 1.0, %v1645_v3 }
 0x454   :  { %1646 = vrcp.f32 %v941_v23  ;;  %v953_v35 = vand.u32 2147483648, %v941_v23  ;;  %v951_v37 = vand.u32 2147483647, %v941_v23  ;;  %vm947_vm14 = vweird.f32 %v941_v23 }
 0x455   :  { %1648 = vtanh.f32 %v958_v29 }
 0x456   :  { %v954_v42 = vor.u32 1.1754944e-38, %v953_v35  ;;  %vm952_vm1 = vcmp.eq.f32.partialorder %v951_v37, 8.507059e+37  ;;  %v1072_v37 = vld [vmem:[#allocation2 + $0x7] ss:$8 sm:$0xf] }
 0x45a   :  { %v1647_v25 = vpop.eup %1646 }
 0x45b   :  { %v943_v27 = vmul.f32 %v1647_v25, %v941_v23  ;;  %vm948_vm13 = vweird.f32 %v1647_v25  ;;  %v1649_v26 = vpop.eup %1648 }
 0x45c   :  { %vm949_vm15 = vmor %vm947_vm14, %vm948_vm13  ;;  %vm1306_vm14 = vcmask 57344  }
 0x45d   :  { %v944_v30 = vsub.f32 1.0, %v943_v27 }
 0x45f   :  { %v945_v14 = vmul.f32 %v1647_v25, %v944_v30 }
 0x461   :  { %v946_v38 = vadd.f32 %v1647_v25, %v945_v14 }
 0x463   :  { %v950_v43 = vsel %vm949_vm15, %v1647_v25, %v946_v38 }
 0x464   :  { %v955_v44 = vsel %vm952_vm1, %v954_v42, %v950_v43 }
 0x465   :  { %v962_v45 = vrot.slane %v955_v44, 1  ;;  %v965_v54 = vmul.f32 %v1649_v26, %v955_v44  ;;  %v968_v62 = vrot.slane %v955_v44, 2 }
 0x467   :  { %v964_v47 = vmul.f32 %v962_v45, %v2108_v41 }
 0x469   :  { %v2147_v55 = vadd.f32 %v965_v54, %v964_v47 }
 0x46b   :  { %1650 = vtanh.f32 %v2147_v55 }
 0x471   :  { %v1651_v0 = vpop.eup %1650 }
 0x472   :  { %v970_v58 = vmul.f32 %v1651_v0, %v968_v62 }
 0x474   :  { %v973_v63 = vpack.c.bf16 %v970_v58, %v970_v58 }
 0x476   :  { %982 = vmatmul.bf16.vlgmr.msra.gmra.mxu0 %v973_v63  ;;  %995 = vmatmul.bf16.vlgmr.msra.gmra.mxu1 %v973_v63 }
 0x477   :  { %1008 = vmatmul.bf16.vlgmr.msra.gmra.mxu2 %v973_v63  ;;  %1021 = vmatmul.bf16.vlgmr.msra.gmra.mxu3 %v973_v63 }
 0x478   :  { %1174 = vmatpush.bf16.msra.mxu0 %v1808_v52  ;;  %1187 = vmatpush.bf16.msra.mxu1 %v1810_v56 }
 0x479   :  { %1200 = vmatpush.bf16.msra.mxu2 %v1812_v57  ;;  %1213 = vmatpush.bf16.msra.mxu3 %v1815_v61 }
 0x47c   :  { %1175 = vmatpush.bf16.msra.mxu0 %v1819_v1  ;;  %1188 = vmatpush.bf16.msra.mxu1 %v1821_v2 }
 0x47d   :  { %1201 = vmatpush.bf16.msra.mxu2 %v1829_v7  ;;  %1214 = vmatpush.bf16.msra.mxu3 %v1831_v11 }
 0x480   :  { %1176 = vmatpush.bf16.msra.mxu0 %v1834_v15  ;;  %1189 = vmatpush.bf16.msra.mxu1 %v1838_v19 }
 0x481   :  { %1202 = vmatpush.bf16.msra.mxu2 %v1840_v20  ;;  %1215 = vmatpush.bf16.msra.mxu3 %v1843_v24  ;;  %v972_v24 = vld [vmem:[#allocation2 + $0x6] ss:$8 sm:$0xf] }
 0x484   :  { %1177 = vmatpush.bf16.msra.mxu0 %v1848_v32  ;;  %1190 = vmatpush.bf16.msra.mxu1 %v1852_v33 }
 0x485   :  { %1203 = vmatpush.bf16.msra.mxu2 %v1854_v34  ;;  %1216 = vmatpush.bf16.msra.mxu3 %v1857_v39 }
 0x488   :  { %1178 = vmatpush.bf16.msra.mxu0 %v1864_v48  ;;  %1191 = vmatpush.bf16.msra.mxu1 %v1868_v51 }
 0x489   :  { %1204 = vmatpush.bf16.msra.mxu2 %v1870_v53  ;;  %1217 = vmatpush.bf16.msra.mxu3 %v1874_v59 }
 0x48c   :  { %1179 = vmatpush.bf16.msra.mxu0 %v1878_v4  ;;  %1192 = vmatpush.bf16.msra.mxu1 %v1882_v8 }
 0x48d   :  { %1205 = vmatpush.bf16.msra.mxu2 %v1884_v9  ;;  %1218 = vmatpush.bf16.msra.mxu3 %v1887_v18 }
 0x490   :  { %1180 = vmatpush.bf16.msra.mxu0 %v1894_v36  ;;  %1193 = vmatpush.bf16.msra.mxu1 %v1898_v40 }
 0x491   :  { %1206 = vmatpush.bf16.msra.mxu2 %v1900_v28  ;;  %1219 = vmatpush.bf16.msra.mxu3 %v1903_v6 }
 0x494   :  { %1181 = vmatpush.bf16.msra.mxu0 %v1906_v46  ;;  %1194 = vmatpush.bf16.msra.mxu1 %v1910_v49 }
 0x495   :  { %1207 = vmatpush.bf16.msra.mxu2 %v1912_v50  ;;  %1220 = vmatpush.bf16.msra.mxu3 %v1915_v60 }
 0x4f3   :  { %v983_v52 = vpop.f32.mrf.mxu0  ;;  %v996_v56 = vpop.f32.mrf.mxu1 }
 0x4f4   :  { %v1030_v57 = vrot.slane %v996_v56, 7 }
 0x4f6   :  { %v1033_v19 = vsel %vm530_vm6, %v983_v52, %v1030_v57 }
 0x4fa   :  { %v1009_v61 = vpop.f32.mrf.mxu2  ;;  %v1022_v1 = vpop.f32.mrf.mxu3 }
 0x4fb   :  { %v1031_v2 = vrot.slane %v1009_v61, 6  ;;  %v1032_v7 = vrot.slane %v1022_v1, 5  ;;  %v985_v11 = vpop.f32.mrf.mxu0  ;;  %v998_v15 = vpop.f32.mrf.mxu1 }
 0x4fd   :  { %v1034_v20 = vsel %vm532_vm7, %v1031_v2, %v1032_v7 }
 0x4fe   :  { %v1035_v32 = vsel %vm534_vm8, %v1033_v19, %v1034_v20 }
 0x4ff   :  { %v1037_v33 = vadd.f32 %v1035_v32, %v972_v24 }
 0x501   :  { %v1544_v34 = vmul.f32 -1.442695, %v1037_v33  ;;  %v1058_v8 = vrot.slane %v1037_v33, 3 }
 0x502   :  { %v1011_v39 = vpop.f32.mrf.mxu2  ;;  %v1024_v48 = vpop.f32.mrf.mxu3 }
 0x503   :  { %1652 = vpow2.f32 %v1544_v34 }
 0x509   :  { %v1653_v51 = vpop.eup %1652 }
 0x50a   :  { %v1041_v53 = vadd.f32 1.0, %v1653_v51 }
 0x50c   :  { %1654 = vrcp.f32 %v1041_v53  ;;  %v1053_v18 = vand.u32 2147483648, %v1041_v53  ;;  %v1051_v40 = vand.u32 2147483647, %v1041_v53  ;;  %vm1047_vm3 = vweird.f32 %v1041_v53 }
 0x50d   :  { %1656 = vtanh.f32 %v1058_v8 }
 0x50e   :  { %v1054_v6 = vor.u32 1.1754944e-38, %v1053_v18  ;;  %vm1052_vm5 = vcmp.eq.f32.partialorder %v1051_v40, 8.507059e+37  ;;  %v1172_v40 = vld [vmem:[#allocation2 + $0x20] ss:$8 sm:$0xf] }
 0x512   :  { %v1655_v59 = vpop.eup %1654 }
 0x513   :  { %v1043_v4 = vmul.f32 %v1655_v59, %v1041_v53  ;;  %vm1048_vm2 = vweird.f32 %v1655_v59  ;;  %v1657_v60 = vpop.eup %1656 }
 0x514   :  { %vm1049_vm4 = vmor %vm1047_vm3, %vm1048_vm2 }
 0x515   :  { %v1044_v9 = vsub.f32 1.0, %v1043_v4 }
 0x517   :  { %v1045_v36 = vmul.f32 %v1655_v59, %v1044_v9 }
 0x519   :  { %v1046_v28 = vadd.f32 %v1655_v59, %v1045_v36 }
 0x51b   :  { %v1050_v46 = vsel %vm1049_vm4, %v1655_v59, %v1046_v28 }
 0x51c   :  { %v1055_v49 = vsel %vm1052_vm5, %v1054_v6, %v1050_v46 }
 0x51d   :  { %v1062_v50 = vrot.slane %v1055_v49, 1  ;;  %v1065_v5 = vmul.f32 %v1657_v60, %v1055_v49  ;;  %v1068_v31 = vrot.slane %v1055_v49, 2 }
 0x51f   :  { %v1064_v41 = vmul.f32 %v1062_v50, %v2147_v55 }
 0x521   :  { %v1066_v10 = vadd.f32 %v1065_v5, %v1064_v41  ;;  %v1278_v5 = vld [vmem:[%s2234_s4 + $0x38] sm:$0xff] }
 0x523   :  { %1658 = vtanh.f32 %v1066_v10 }
 0x529   :  { %v1659_v12 = vpop.eup %1658 }
 0x52a   :  { %v1070_v13 = vmul.f32 %v1659_v12, %v1068_v31  ;;  %v1276_v31 = vld [vmem:[%s2234_s4 + $0x28] sm:$0xff] }
 0x52c   :  { %v1073_v16 = vpack.c.bf16 %v1070_v13, %v1070_v13  ;;  %v1275_v13 = vld [vmem:[%s2234_s4 + $0x20] sm:$0xff] }
 0x52e   :  { %1082 = vmatmul.bf16.vlgmr.msrb.gmra.mxu0 %v1073_v16  ;;  %1095 = vmatmul.bf16.vlgmr.msrb.gmra.mxu1 %v1073_v16 }
 0x52f   :  { %1108 = vmatmul.bf16.vlgmr.msrb.gmra.mxu2 %v1073_v16  ;;  %1121 = vmatmul.bf16.vlgmr.msrb.gmra.mxu3 %v1073_v16 }
 0x530   :  { %1294 = vmatpush.msrb.mxu0 %v1278_v5 }
 0x5ab   :  { %v1083_v17 = vpop.f32.mrf.mxu0  ;;  %v1096_v21 = vpop.f32.mrf.mxu1 }
 0x5ac   :  { %v1130_v22 = vrot.slane %v1096_v21, 7  ;;  %v1274_v21 = vld [vmem:[%s2234_s4 + $0x18] sm:$0xff] }
 0x5ae   :  { %v1133_v35 = vsel %vm530_vm6, %v1083_v17, %v1130_v22 }
 0x5b2   :  { %v1109_v3 = vpop.f32.mrf.mxu2  ;;  %v1122_v23 = vpop.f32.mrf.mxu3 }
 0x5b3   :  { %v1131_v25 = vrot.slane %v1109_v3, 6  ;;  %v1132_v27 = vrot.slane %v1122_v23, 5  ;;  %v1085_v29 = vpop.f32.mrf.mxu0  ;;  %v1098_v30 = vpop.f32.mrf.mxu1  ;;  %v1273_v23 = vld [vmem:[%s2234_s4 + $0x10] sm:$0xff] }
 0x5b4   :  { %v1272_v29 = vld [vmem:[%s2234_s4 + $0x8] sm:$0xff] }
 0x5b5   :  { %v1134_v14 = vsel %vm532_vm7, %v1131_v25, %v1132_v27 }
 0x5b6   :  { %v1135_v38 = vsel %vm534_vm8, %v1133_v35, %v1134_v14  ;;  %v1271_v14 = vld [vmem:[%s2234_s4] sm:$0xff] }
 0x5b7   :  { %v1137_v42 = vadd.f32 %v1135_v38, %v1072_v37 }
 0x5b9   :  { %v1545_v43 = vmul.f32 -1.442695, %v1137_v42  ;;  %v1158_v62 = vrot.slane %v1137_v42, 3 }
 0x5ba   :  { %v1111_v44 = vpop.f32.mrf.mxu2  ;;  %v1124_v45 = vpop.f32.mrf.mxu3 }
 0x5bb   :  { %1660 = vpow2.f32 %v1545_v43 }
 0x5c1   :  { %v1661_v26 = vpop.eup %1660 }
 0x5c2   :  { %v1141_v47 = vadd.f32 1.0, %v1661_v26 }
 0x5c4   :  { %1662 = vrcp.f32 %v1141_v47  ;;  %v1153_v58 = vand.u32 2147483648, %v1141_v47  ;;  %v1151_v52 = vand.u32 2147483647, %v1141_v47  ;;  %vm1147_vm10 = vweird.f32 %v1141_v47 }
 0x5c5   :  { %1664 = vtanh.f32 %v1158_v62 }
 0x5c6   :  { %v1154_v57 = vor.u32 1.1754944e-38, %v1153_v58  ;;  %vm1152_vm12 = vcmp.eq.f32.partialorder %v1151_v52, 8.507059e+37  ;;  %v1279_v58 = vld [vmem:[%s2234_s4 + $0x40] sm:$0x1] }
 0x5ca   :  { %v1663_v54 = vpop.eup %1662 }
 0x5cb   :  { %v1143_v55 = vmul.f32 %v1663_v54, %v1141_v47  ;;  %vm1148_vm9 = vweird.f32 %v1663_v54  ;;  %v1665_v7 = vpop.eup %1664 }
 0x5cc   :  { %vm1149_vm11 = vmor %vm1147_vm10, %vm1148_vm9 }
 0x5cd   :  { %v1144_v0 = vsub.f32 1.0, %v1143_v55 }
 0x5cf   :  { %v1145_v63 = vmul.f32 %v1663_v54, %v1144_v0 }
 0x5d1   :  { %v1146_v56 = vadd.f32 %v1663_v54, %v1145_v63 }
 0x5d3   :  { %v1150_v61 = vsel %vm1149_vm11, %v1663_v54, %v1146_v56 }
 0x5d4   :  { %v1155_v1 = vsel %vm1152_vm12, %v1154_v57, %v1150_v61 }
 0x5d5   :  { %v1162_v2 = vrot.slane %v1155_v1, 1  ;;  %v1165_v15 = vmul.f32 %v1665_v7, %v1155_v1  ;;  %v1168_v20 = vrot.slane %v1155_v1, 2 }
 0x5d7   :  { %v1164_v11 = vmul.f32 %v1162_v2, %v1066_v10  ;;  %v1277_v10 = vld [vmem:[%s2234_s4 + $0x30] sm:$0xff] }
 0x5d8   :  { %1295 = vmatpush.msrb.mxu0 %v1277_v10 }
 0x5d9   :  { %v2189_v19 = vadd.f32 %v1165_v15, %v1164_v11 }
 0x5da   :  { %1296 = vmatpush.msrb.mxu0 %v1276_v31 }
 0x5db   :  { %1666 = vtanh.f32 %v2189_v19 }
 0x5dc   :  { %1297 = vmatpush.msrb.mxu0 %v1275_v13 }
 0x5de   :  { %1298 = vmatpush.msrb.mxu0 %v1274_v21 }
 0x5e0   :  { %1299 = vmatpush.msrb.mxu0 %v1273_v23 }
 0x5e1   :  { %v1667_v24 = vpop.eup %1666 }
 0x5e2   :  { %v1170_v32 = vmul.f32 %v1667_v24, %v1168_v20  ;;  %1300 = vmatpush.msrb.mxu0 %v1272_v29 }
 0x5e4   :  { %v1173_v33 = vpack.c.bf16 %v1170_v32, %v1170_v32  ;;  %1301 = vmatpush.msrb.mxu0 %v1271_v14 }
 0x5e6   :  { %1182 = vmatmul.bf16.vlgmr.msra.gmra.mxu0 %v1173_v33  ;;  %1195 = vmatmul.bf16.vlgmr.msra.gmra.mxu1 %v1173_v33 }
 0x5e7   :  { %1208 = vmatmul.bf16.vlgmr.msra.gmra.mxu2 %v1173_v33  ;;  %1221 = vmatmul.bf16.vlgmr.msra.gmra.mxu3 %v1173_v33 }
 0x663   :  { %v1183_v34 = vpop.f32.mrf.mxu0  ;;  %v1196_v39 = vpop.f32.mrf.mxu1 }
 0x664   :  { %v1230_v48 = vrot.slane %v1196_v39, 7 }
 0x666   :  { %v1233_v18 = vsel %vm530_vm6, %v1183_v34, %v1230_v48 }
 0x66a   :  { %v1209_v51 = vpop.f32.mrf.mxu2  ;;  %v1222_v53 = vpop.f32.mrf.mxu3 }
 0x66b   :  { %v1231_v59 = vrot.slane %v1209_v51, 6  ;;  %v1232_v4 = vrot.slane %v1222_v53, 5  ;;  %v1185_v8 = vpop.f32.mrf.mxu0  ;;  %v1198_v9 = vpop.f32.mrf.mxu1 }
 0x66d   :  { %v1234_v36 = vsel %vm532_vm7, %v1231_v59, %v1232_v4 }
 0x66e   :  { %v1235_v28 = vsel %vm534_vm8, %v1233_v18, %v1234_v36 }
 0x66f   :  { %v1237_v6 = vadd.f32 %v1235_v28, %v1172_v40 }
 0x671   :  { %v1546_v46 = vmul.f32 -1.442695, %v1237_v6  ;;  %v1258_v17 = vrot.slane %v1237_v6, 3 }
 0x672   :  { %v1211_v49 = vpop.f32.mrf.mxu2  ;;  %v1224_v50 = vpop.f32.mrf.mxu3 }
 0x673   :  { %1668 = vpow2.f32 %v1546_v46 }
 0x679   :  { %v1669_v60 = vpop.eup %1668 }
 0x67a   :  { %v1241_v41 = vadd.f32 1.0, %v1669_v60 }
 0x67c   :  { %1670 = vrcp.f32 %v1241_v41  ;;  %v1253_v3 = vand.u32 2147483648, %v1241_v41  ;;  %v1251_v27 = vand.u32 2147483647, %v1241_v41  ;;  %vm1247_vm7 = vweird.f32 %v1241_v41 }
 0x67d   :  { %1672 = vtanh.f32 %v1258_v17 }
 0x67e   :  { %v1254_v35 = vor.u32 1.1754944e-38, %v1253_v3  ;;  %vm1252_vm13 = vcmp.eq.f32.partialorder %v1251_v27, 8.507059e+37 }
 0x682   :  { %v1671_v12 = vpop.eup %1670 }
 0x683   :  { %v1243_v16 = vmul.f32 %v1671_v12, %v1241_v41  ;;  %vm1248_vm6 = vweird.f32 %v1671_v12  ;;  %v1673_v43 = vpop.eup %1672 }
 0x684   :  { %vm1249_vm8 = vmor %vm1247_vm7, %vm1248_vm6 }
 0x685   :  { %v1244_v22 = vsub.f32 1.0, %v1243_v16 }
 0x687   :  { %v1245_v25 = vmul.f32 %v1671_v12, %v1244_v22 }
 0x689   :  { %v1246_v30 = vadd.f32 %v1671_v12, %v1245_v25 }
 0x68b   :  { %v1250_v37 = vsel %vm1249_vm8, %v1671_v12, %v1246_v30 }
 0x68c   :  { %v1255_v38 = vsel %vm1252_vm13, %v1254_v35, %v1250_v37 }
 0x68d   :  { %v1262_v42 = vrot.slane %v1255_v38, 1  ;;  %v1265_v45 = vmul.f32 %v1673_v43, %v1255_v38  ;;  %v1268_v47 = vrot.slane %v1255_v38, 2 }
 0x68f   :  { %v1264_v44 = vmul.f32 %v1262_v42, %v2189_v19 }
 0x691   :  { %v1266_v26 = vadd.f32 %v1265_v45, %v1264_v44 }
 0x693   :  { %1674 = vtanh.f32 %v1266_v26 }
 0x699   :  { %v1675_v54 = vpop.eup %1674 }
 0x69a   :  { %v1270_v55 = vmul.f32 %v1675_v54, %v1268_v47 }
 0x69c   :  { %v1281_v62 = vperm.slane %v1270_v55, 0 }
 0x69e   :  { %1282 = vrot.lane.b32.xlu0 %v1281_v62, %s1763_s21 }
 0x710   :  { %v1283_v0 = vpop.permute.xlu0 %1282 }
 0x711   :  { %1547 = vmatmul.msk.f32.vlgmr.msrb.gmra.mxu0 %vm167_vm0, %v1283_v0 }
 0x78e   :  { %v1303_v63 = vpop.f32.mrf.mxu0 }
 0x78f   :  { %v1304_v52 = vadd.f32 %v1303_v63, %v1279_v58 }
 0x791   :  { %v1307_v56 = vsel %vm1306_vm14, %v1304_v52, -inf }
 0x792   :  { %1308 = vmax.xlane.f32.xlu0 %v1307_v56 }
 0x805   :  { %v1309_v57 = vpop.xlane.xlu0 %1308 }
 0x806   :  { %v1310_v61 = vsub.f32 %v1304_v52, %v1309_v57 }
 0x808   :  { %v1311_v1 = vmul.f32 1.442695, %v1310_v61 }
 0x80a   :  { %1676 = vpow2.f32 %v1311_v1 }
 0x810   :  { %v1677_v2 = vpop.eup %1676 }
 0x811   :  { %v1313_v7 = vsel %vm1306_vm14, %v1677_v2, 0.0 }
 0x812   :  { %1314 = vadd.xlane.f32.xlu1 %v1313_v7 }
 0x885   :  { %v1315_v11 = vpop.xlane.xlu1 %1314 }
 0x886   :  { %1678 = vrcp.f32 %v1315_v11 }
 0x88c   :  { %v1679_v15 = vpop.eup %1678 }
 0x88d   :  { %v1317_v19 = vmul.f32 %v1679_v15, %v1677_v2 }
 0x88f   :  { %1318 = vst.msk [vmem:[#allocation8] sm:$0x1] %vm1306_vm14, %v1317_v19 }
 0x890   :  { %1329 = dma.vmem_to_hbm [thread:$0]  %s1325_s25, 16, %s1327_s27, [#allocation5]  }
 0x891   :  { %1756 = dma.done.wait [#allocation5], 16  }
 0x892   :  { %1757 = vsyncadd [#allocation5], 4294967280 }
 0x893   :  { %1334 = vsyncpa [#allocation4], 1 }
 0x894   :  { %1335 = vsyncpa [#allocation7], 1 }
 0x895   :  { %1336 = vsyncpa [#allocation5], 1 }

</bundles_post_ra>
